<compile_context>
chip_gen: v5e
topology: v5e:2x2
jax: 0.10.0
libtpu: 0.0.40
codegen_flags: <defaults>
</compile_context>

<pallas_src>
import functools
import math

import jax
import jax.numpy as jnp
from jax.experimental import pallas as pl
from jax.experimental.pallas import tpu as pltpu

CHUNK = 64  # hyperparams['chunk_size']
_HP = jax.lax.Precision.HIGHEST


# ---------------------------------------------------------------------------
# Pallas kernel: one (batch, query-chunk) grid step, all heads together
# ---------------------------------------------------------------------------
def _attn_kernel(scale_ref, q_ref, k_ref, v_ref, o_ref, *, masked, chunk):
    # q_ref: (1, H, TQ, D)   k_ref/v_ref: (1, H, T, D)   o_ref: (1, TQ, H*D)
    qi = pl.program_id(1)
    _, H, TQ, D = q_ref.shape
    T = k_ref.shape[2]

    # Fold the learnable scale into q (H*TQ*D elements) instead of scaling the
    # (TQ, T) score tiles -> ~8x fewer VPU multiplies on the hot path.
    scale = scale_ref[0]
    q = q_ref[0] * scale          # (H, TQ, D)
    k = k_ref[0]                  # (H, T, D)
    v = v_ref[0]                  # (H, T, D)

    if masked:
        # Chunk-causal mask of the PyTorch module, built once per grid step.
        # Local condition  c_loc >= r_loc + (j - i + 1)  becomes, in global
        # coordinates,  cols - rows >= 2*(j_blk - qi)*chunk + 1.  The PyTorch
        # "only when i >= j" guard is implied: for j_blk > qi the threshold
        # exceeds the largest possible (cols - rows), so the predicate is
        # never true there.
        rows = jax.lax.broadcasted_iota(jnp.int32, (TQ, T), 0) + qi * TQ
        cols = jax.lax.broadcasted_iota(jnp.int32, (TQ, T), 1)
        j_blk = cols // chunk
        neg_mask = (cols - rows) >= (2 * (j_blk - qi) * chunk + 1)

    for h in range(H):
        # scores_h = (q_h * scale) @ k_h^T   (contract head_dim)
        s = jax.lax.dot_general(
            q[h], k[h], (((1,), (1,)), ((), ())),
            preferred_element_type=jnp.float32)                 # (TQ, T)
        if masked:
            s = jnp.where(neg_mask, -jnp.inf, s)

        # Explicit softmax: max/exp/sum + EUP approximate reciprocal, refined
        # with one Newton step so accuracy stays at f32 level.  The diagonal
        # of the within-chunk block is never masked, so rows cannot be all
        # -inf and the max-subtraction keeps exp() finite.
        m = jnp.max(s, axis=-1, keepdims=True)                  # (TQ, 1)
        p = jnp.exp(s - m)                                      # (TQ, T)
        l = jnp.sum(p, axis=-1, keepdims=True)                  # (TQ, 1)
        r = pl.reciprocal(l, approx=True)
        r = r * (2.0 - l * r)                                   # Newton refine
        w = p * r

        out_h = jnp.dot(w, v[h], preferred_element_type=jnp.float32)  # (TQ, D)
        # Heads land contiguously on the lane axis of the lane-dense output
        # block (matches transpose(1,2).view(B,T,C) of the reference).
        o_ref[0, :, h * D:(h + 1) * D] = out_h.astype(o_ref.dtype)


def _attention_core(q, k, v, attn_scale, *, masked, chunk):
    """q, k, v: (B, H, T, D) float32.  Returns (B, T, H*D) float32."""
    B, H, T, D = q.shape
    TQ = chunk
    assert T % TQ == 0, "sequence length must be a multiple of the chunk size"

    kernel = functools.partial(_attn_kernel, masked=masked, chunk=chunk)
    return pl.pallas_call(
        kernel,
        out_shape=jax.ShapeDtypeStruct((B, T, H * D), jnp.float32),
        grid=(B, T // TQ),
        in_specs=[
            pl.BlockSpec(memory_space=pltpu.SMEM),                     # attn_scale
            pl.BlockSpec((1, H, TQ, D), lambda b, qi: (b, 0, qi, 0)),  # q chunk (all heads)
            pl.BlockSpec((1, H, T, D), lambda b, qi: (b, 0, 0, 0)),    # full K (all heads)
            pl.BlockSpec((1, H, T, D), lambda b, qi: (b, 0, 0, 0)),    # full V (all heads)
        ],
        out_specs=pl.BlockSpec((1, TQ, H * D), lambda b, qi: (b, qi, 0)),
        compiler_params=pltpu.CompilerParams(
            dimension_semantics=("parallel", "parallel")),
    )(attn_scale, q, k, v)


# ---------------------------------------------------------------------------
# Module forward (projections in plain JAX, attention core in Pallas)
# ---------------------------------------------------------------------------
def memory_efficient_attention(x, params, n_heads, *, masked=False):
    B, T, C = x.shape
    H = n_heads
    D = C // H

    # Head-split layout produced directly by the projection einsum; the layout
    # change is fused into the matmul instead of reshape+transpose round trips.
    def proj_split(w, b):
        y = jnp.einsum("btc,hdc->bhtd", x, w.reshape(H, D, C), precision=_HP)
        return y + b.reshape(1, H, 1, D)

    q = proj_split(params["wq"], params["bq"])
    k = proj_split(params["wk"], params["bk"])
    v = proj_split(params["wv"], params["bv"])

    # Kernel output is already (B, T, C) with heads concatenated on the last
    # axis -> feeds the output projection directly, no transpose needed.
    out = _attention_core(q, k, v, params["attn_scale"], masked=masked, chunk=CHUNK)
    return jnp.einsum("btc,oc->bto", out, params["wo"], precision=_HP) + params["bo"]


# ---------------------------------------------------------------------------
# Pure-JAX reference mirroring the PyTorch chunked forward pass exactly
# ---------------------------------------------------------------------------
def reference_forward(x, params, n_heads, *, masked=False):
    B, T, C = x.shape
    D = C // n_heads

    def proj(w, b):
        y = jnp.einsum("btc,oc->bto", x, w, precision=_HP) + b
        return y.reshape(B, T, n_heads, D).transpose(0, 2, 1, 3)

    q = proj(params["wq"], params["bq"])
    k = proj(params["wk"], params["bk"])
    v = proj(params["wv"], params["bv"])
    scale = params["attn_scale"][0]

    out = jnp.zeros_like(q)
    for i in range(0, T, CHUNK):
        i_end = min(i + CHUNK, T)
        qc = q[:, :, i:i_end]
        scores = []
        for j in range(0, T, CHUNK):
            j_end = min(j + CHUNK, T)
            kc = k[:, :, j:j_end]
            s = jnp.einsum("bhqd,bhkd->bhqk", qc, kc, precision=_HP) * scale
            if masked and i >= j:
                m = jnp.triu(jnp.ones((i_end - i, j_end - j), bool), k=j - i + 1)
                s = jnp.where(m[None, None], -jnp.inf, s)
            scores.append(s)
        w = jax.nn.softmax(jnp.concatenate(scores, axis=-1), axis=-1)
        co = jnp.zeros_like(qc)
        start = 0
        for j in range(0, T, CHUNK):
            j_end = min(j + CHUNK, T)
            co = co + jnp.einsum("bhqk,bhkd->bhqd",
                                 w[..., start:start + (j_end - j)], v[:, :, j:j_end],
                                 precision=_HP)
            start += j_end - j
        out = out.at[:, :, i:i_end].set(co)
    out = out.transpose(0, 2, 1, 3).reshape(B, T, C)
    return jnp.einsum("btc,oc->bto", out, params["wo"], precision=_HP) + params["bo"]


# ---------------------------------------------------------------------------
# Main
# ---------------------------------------------------------------------------
if __name__ == "__main__":
    B, T = 2, 128
    embed_dim, n_heads = 64, 4
    head_dim = embed_dim // n_heads

    key = jax.random.PRNGKey(0)
    ks = jax.random.split(key, 10)

    def lin_init(kw, kb, fan_in, fan_out):
        bound = 1.0 / math.sqrt(fan_in)
        w = jax.random.uniform(kw, (fan_out, fan_in), jnp.float32, -bound, bound)
        b = jax.random.uniform(kb, (fan_out,), jnp.float32, -bound, bound)
        return w, b

    wq, bq = lin_init(ks[0], ks[1], embed_dim, embed_dim)
    wk, bk = lin_init(ks[2], ks[3], embed_dim, embed_dim)
    wv, bv = lin_init(ks[4], ks[5], embed_dim, embed_dim)
    wo, bo = lin_init(ks[6], ks[7], embed_dim, embed_dim)
    params = dict(
        wq=wq, bq=bq, wk=wk, bk=bk, wv=wv, bv=bv, wo=wo, bo=bo,
        attn_scale=jnp.ones((1,), jnp.float32) * (1.0 / math.sqrt(head_dim)),
    )
    # (score_running_mean / score_running_var / score_threshold are unused in forward)

    x = jax.random.normal(ks[8], (B, T, embed_dim), jnp.float32)

    # attn_mask=None path (default)
    out = memory_efficient_attention(x, params, n_heads, masked=False)
    out = jax.block_until_ready(out)
    ref = reference_forward(x, params, n_heads, masked=False)
    assert jnp.allclose(out, ref, atol=1e-4, rtol=1e-4), "unmasked mismatch"

    # attn_mask provided path (reproduces the module's chunk-mask semantics)
    out_m = memory_efficient_attention(x, params, n_heads, masked=True)
    out_m = jax.block_until_ready(out_m)
    ref_m = reference_forward(x, params, n_heads, masked=True)
    assert jnp.allclose(out_m, ref_m, atol=1e-4, rtol=1e-4), "masked mismatch"

    print("KERNEL_OK")
</pallas_src>

<mosaic_0001>
module attributes {stable_mosaic.version = 11 : i64} {
  func.func @_attn_kernel(%arg0: i32, %arg1: i32, %arg2: memref<1xf32, #tpu.memory_space<smem>>, %arg3: memref<1x4x64x16xf32, #tpu.memory_space<vmem>>, %arg4: memref<1x4x128x16xf32, #tpu.memory_space<vmem>>, %arg5: memref<1x4x128x16xf32, #tpu.memory_space<vmem>>, %arg6: memref<1x64x64xf32, #tpu.memory_space<vmem>>) attributes {dimension_semantics = [#tpu.dimension_semantics<parallel>, #tpu.dimension_semantics<parallel>], iteration_bounds = array<i64: 2, 2>, scalar_prefetch = 0 : i64, scratch_operands = 0 : i64, tpu.core_type = #tpu.core_type<tc>, window_params = [{transform_indices = @transform_0, window_bounds = array<i64: 1>}, {transform_indices = @transform_1, window_bounds = array<i64: 1, 4, 64, 16>}, {transform_indices = @transform_2, window_bounds = array<i64: 1, 4, 128, 16>}, {transform_indices = @transform_3, window_bounds = array<i64: 1, 4, 128, 16>}, {transform_indices = @transform_4, window_bounds = array<i64: 1, 64, 64>}]} {
    %c0 = arith.constant 0 : index
    %0 = memref.load %arg2[%c0] : memref<1xf32, #tpu.memory_space<smem>>
    %c0_0 = arith.constant 0 : index
    %c0_1 = arith.constant 0 : index
    %c0_2 = arith.constant 0 : index
    %c0_3 = arith.constant 0 : index
    %1 = vector.load %arg3[%c0_0, %c0_1, %c0_2, %c0_3] : memref<1x4x64x16xf32, #tpu.memory_space<vmem>>, vector<1x4x64x16xf32>
    %2 = vector.shape_cast %1 : vector<1x4x64x16xf32> to vector<4x64x16xf32>
    %3 = vector.broadcast %0 : f32 to vector<4x64x16xf32>
    %4 = arith.mulf %2, %3 : vector<4x64x16xf32>
    %c0_4 = arith.constant 0 : index
    %c0_5 = arith.constant 0 : index
    %c0_6 = arith.constant 0 : index
    %c0_7 = arith.constant 0 : index
    %5 = vector.load %arg4[%c0_4, %c0_5, %c0_6, %c0_7] : memref<1x4x128x16xf32, #tpu.memory_space<vmem>>, vector<1x4x128x16xf32>
    %6 = vector.shape_cast %5 : vector<1x4x128x16xf32> to vector<4x128x16xf32>
    %c0_8 = arith.constant 0 : index
    %c0_9 = arith.constant 0 : index
    %c0_10 = arith.constant 0 : index
    %c0_11 = arith.constant 0 : index
    %7 = vector.load %arg5[%c0_8, %c0_9, %c0_10, %c0_11] : memref<1x4x128x16xf32, #tpu.memory_space<vmem>>, vector<1x4x128x16xf32>
    %8 = vector.shape_cast %7 : vector<1x4x128x16xf32> to vector<4x128x16xf32>
    %9 = vector.extract_strided_slice %4 {offsets = [0, 0, 0], sizes = [1, 64, 16], strides = [1, 1, 1]} : vector<4x64x16xf32> to vector<1x64x16xf32>
    %10 = vector.shape_cast %9 : vector<1x64x16xf32> to vector<64x16xf32>
    %11 = vector.extract_strided_slice %6 {offsets = [0, 0, 0], sizes = [1, 128, 16], strides = [1, 1, 1]} : vector<4x128x16xf32> to vector<1x128x16xf32>
    %12 = vector.shape_cast %11 : vector<1x128x16xf32> to vector<128x16xf32>
    %cst = arith.constant dense<0.000000e+00> : vector<64x128xf32>
    %13 = tpu.matmul %10, %12, %cst {dimension_numbers = #tpu.dot_dimension_numbers<[1], [1], [0], [0], [0, 0, 1, 0], [], []>} : vector<64x16xf32>, vector<128x16xf32>, vector<64x128xf32> -> vector<64x128xf32>
    %cst_12 = arith.constant dense<0xFF800000> : vector<64xf32>
    %14 = vector.multi_reduction <maximumf>, %13, %cst_12 [1] : vector<64x128xf32> to vector<64xf32>
    %15 = vector.shape_cast %14 : vector<64xf32> to vector<64x1xf32>
    %16 = vector.broadcast %15 : vector<64x1xf32> to vector<64x128xf32>
    %17 = arith.subf %13, %16 : vector<64x128xf32>
    %18 = math.exp %17 : vector<64x128xf32>
    %cst_13 = arith.constant dense<0.000000e+00> : vector<64xf32>
    %19 = vector.multi_reduction <add>, %18, %cst_13 [1] : vector<64x128xf32> to vector<64xf32>
    %20 = vector.shape_cast %19 : vector<64xf32> to vector<64x1xf32>
    %21 = tpu.reciprocal %20 {approx = true} : vector<64x1xf32> -> vector<64x1xf32>
    %22 = arith.mulf %20, %21 : vector<64x1xf32>
    %cst_14 = arith.constant 2.000000e+00 : f32
    %23 = vector.broadcast %cst_14 : f32 to vector<64x1xf32>
    %24 = arith.subf %23, %22 : vector<64x1xf32>
    %25 = arith.mulf %21, %24 : vector<64x1xf32>
    %26 = vector.broadcast %25 : vector<64x1xf32> to vector<64x128xf32>
    %27 = arith.mulf %18, %26 : vector<64x128xf32>
    %28 = vector.extract_strided_slice %8 {offsets = [0, 0, 0], sizes = [1, 128, 16], strides = [1, 1, 1]} : vector<4x128x16xf32> to vector<1x128x16xf32>
    %29 = vector.shape_cast %28 : vector<1x128x16xf32> to vector<128x16xf32>
    %cst_15 = arith.constant dense<0.000000e+00> : vector<64x16xf32>
    %30 = tpu.matmul %27, %29, %cst_15 {dimension_numbers = #tpu.dot_dimension_numbers<[1], [0], [0], [1], [0, 0, 1, 1], [], []>} : vector<64x128xf32>, vector<128x16xf32>, vector<64x16xf32> -> vector<64x16xf32>
    %c0_16 = arith.constant 0 : index
    %c0_17 = arith.constant 0 : index
    %c0_18 = arith.constant 0 : index
    %31 = vector.load %arg6[%c0_16, %c0_17, %c0_18] : memref<1x64x64xf32, #tpu.memory_space<vmem>>, vector<1x64x16xf32>
    %32 = vector.shape_cast %31 : vector<1x64x16xf32> to vector<64x16xf32>
    %33 = vector.shape_cast %30 : vector<64x16xf32> to vector<1x64x16xf32>
    tpu.vector_store %arg6[%c0_16, %c0_17, %c0_18], %33 {strides = array<i32>} : memref<1x64x64xf32, #tpu.memory_space<vmem>>, vector<1x64x16xf32>,
    %34 = vector.extract_strided_slice %4 {offsets = [1, 0, 0], sizes = [1, 64, 16], strides = [1, 1, 1]} : vector<4x64x16xf32> to vector<1x64x16xf32>
    %35 = vector.shape_cast %34 : vector<1x64x16xf32> to vector<64x16xf32>
    %36 = vector.extract_strided_slice %6 {offsets = [1, 0, 0], sizes = [1, 128, 16], strides = [1, 1, 1]} : vector<4x128x16xf32> to vector<1x128x16xf32>
    %37 = vector.shape_cast %36 : vector<1x128x16xf32> to vector<128x16xf32>
    %cst_19 = arith.constant dense<0.000000e+00> : vector<64x128xf32>
    %38 = tpu.matmul %35, %37, %cst_19 {dimension_numbers = #tpu.dot_dimension_numbers<[1], [1], [0], [0], [0, 0, 1, 0], [], []>} : vector<64x16xf32>, vector<128x16xf32>, vector<64x128xf32> -> vector<64x128xf32>
    %cst_20 = arith.constant dense<0xFF800000> : vector<64xf32>
    %39 = vector.multi_reduction <maximumf>, %38, %cst_20 [1] : vector<64x128xf32> to vector<64xf32>
    %40 = vector.shape_cast %39 : vector<64xf32> to vector<64x1xf32>
    %41 = vector.broadcast %40 : vector<64x1xf32> to vector<64x128xf32>
    %42 = arith.subf %38, %41 : vector<64x128xf32>
    %43 = math.exp %42 : vector<64x128xf32>
    %cst_21 = arith.constant dense<0.000000e+00> : vector<64xf32>
    %44 = vector.multi_reduction <add>, %43, %cst_21 [1] : vector<64x128xf32> to vector<64xf32>
    %45 = vector.shape_cast %44 : vector<64xf32> to vector<64x1xf32>
    %46 = tpu.reciprocal %45 {approx = true} : vector<64x1xf32> -> vector<64x1xf32>
    %47 = arith.mulf %45, %46 : vector<64x1xf32>
    %cst_22 = arith.constant 2.000000e+00 : f32
    %48 = vector.broadcast %cst_22 : f32 to vector<64x1xf32>
    %49 = arith.subf %48, %47 : vector<64x1xf32>
    %50 = arith.mulf %46, %49 : vector<64x1xf32>
    %51 = vector.broadcast %50 : vector<64x1xf32> to vector<64x128xf32>
    %52 = arith.mulf %43, %51 : vector<64x128xf32>
    %53 = vector.extract_strided_slice %8 {offsets = [1, 0, 0], sizes = [1, 128, 16], strides = [1, 1, 1]} : vector<4x128x16xf32> to vector<1x128x16xf32>
    %54 = vector.shape_cast %53 : vector<1x128x16xf32> to vector<128x16xf32>
    %cst_23 = arith.constant dense<0.000000e+00> : vector<64x16xf32>
    %55 = tpu.matmul %52, %54, %cst_23 {dimension_numbers = #tpu.dot_dimension_numbers<[1], [0], [0], [1], [0, 0, 1, 1], [], []>} : vector<64x128xf32>, vector<128x16xf32>, vector<64x16xf32> -> vector<64x16xf32>
    %c0_24 = arith.constant 0 : index
    %c0_25 = arith.constant 0 : index
    %c16 = arith.constant 16 : index
    %56 = vector.load %arg6[%c0_24, %c0_25, %c16] : memref<1x64x64xf32, #tpu.memory_space<vmem>>, vector<1x64x16xf32>
    %57 = vector.shape_cast %56 : vector<1x64x16xf32> to vector<64x16xf32>
    %58 = vector.shape_cast %55 : vector<64x16xf32> to vector<1x64x16xf32>
    tpu.vector_store %arg6[%c0_24, %c0_25, %c16], %58 {strides = array<i32>} : memref<1x64x64xf32, #tpu.memory_space<vmem>>, vector<1x64x16xf32>,
    %59 = vector.extract_strided_slice %4 {offsets = [2, 0, 0], sizes = [1, 64, 16], strides = [1, 1, 1]} : vector<4x64x16xf32> to vector<1x64x16xf32>
    %60 = vector.shape_cast %59 : vector<1x64x16xf32> to vector<64x16xf32>
    %61 = vector.extract_strided_slice %6 {offsets = [2, 0, 0], sizes = [1, 128, 16], strides = [1, 1, 1]} : vector<4x128x16xf32> to vector<1x128x16xf32>
    %62 = vector.shape_cast %61 : vector<1x128x16xf32> to vector<128x16xf32>
    %cst_26 = arith.constant dense<0.000000e+00> : vector<64x128xf32>
    %63 = tpu.matmul %60, %62, %cst_26 {dimension_numbers = #tpu.dot_dimension_numbers<[1], [1], [0], [0], [0, 0, 1, 0], [], []>} : vector<64x16xf32>, vector<128x16xf32>, vector<64x128xf32> -> vector<64x128xf32>
    %cst_27 = arith.constant dense<0xFF800000> : vector<64xf32>
    %64 = vector.multi_reduction <maximumf>, %63, %cst_27 [1] : vector<64x128xf32> to vector<64xf32>
    %65 = vector.shape_cast %64 : vector<64xf32> to vector<64x1xf32>
    %66 = vector.broadcast %65 : vector<64x1xf32> to vector<64x128xf32>
    %67 = arith.subf %63, %66 : vector<64x128xf32>
    %68 = math.exp %67 : vector<64x128xf32>
    %cst_28 = arith.constant dense<0.000000e+00> : vector<64xf32>
    %69 = vector.multi_reduction <add>, %68, %cst_28 [1] : vector<64x128xf32> to vector<64xf32>
    %70 = vector.shape_cast %69 : vector<64xf32> to vector<64x1xf32>
    %71 = tpu.reciprocal %70 {approx = true} : vector<64x1xf32> -> vector<64x1xf32>
    %72 = arith.mulf %70, %71 : vector<64x1xf32>
    %cst_29 = arith.constant 2.000000e+00 : f32
    %73 = vector.broadcast %cst_29 : f32 to vector<64x1xf32>
    %74 = arith.subf %73, %72 : vector<64x1xf32>
    %75 = arith.mulf %71, %74 : vector<64x1xf32>
    %76 = vector.broadcast %75 : vector<64x1xf32> to vector<64x128xf32>
    %77 = arith.mulf %68, %76 : vector<64x128xf32>
    %78 = vector.extract_strided_slice %8 {offsets = [2, 0, 0], sizes = [1, 128, 16], strides = [1, 1, 1]} : vector<4x128x16xf32> to vector<1x128x16xf32>
    %79 = vector.shape_cast %78 : vector<1x128x16xf32> to vector<128x16xf32>
    %cst_30 = arith.constant dense<0.000000e+00> : vector<64x16xf32>
    %80 = tpu.matmul %77, %79, %cst_30 {dimension_numbers = #tpu.dot_dimension_numbers<[1], [0], [0], [1], [0, 0, 1, 1], [], []>} : vector<64x128xf32>, vector<128x16xf32>, vector<64x16xf32> -> vector<64x16xf32>
    %c0_31 = arith.constant 0 : index
    %c0_32 = arith.constant 0 : index
    %c32 = arith.constant 32 : index
    %81 = vector.load %arg6[%c0_31, %c0_32, %c32] : memref<1x64x64xf32, #tpu.memory_space<vmem>>, vector<1x64x16xf32>
    %82 = vector.shape_cast %81 : vector<1x64x16xf32> to vector<64x16xf32>
    %83 = vector.shape_cast %80 : vector<64x16xf32> to vector<1x64x16xf32>
    tpu.vector_store %arg6[%c0_31, %c0_32, %c32], %83 {strides = array<i32>} : memref<1x64x64xf32, #tpu.memory_space<vmem>>, vector<1x64x16xf32>,
    %84 = vector.extract_strided_slice %4 {offsets = [3, 0, 0], sizes = [1, 64, 16], strides = [1, 1, 1]} : vector<4x64x16xf32> to vector<1x64x16xf32>
    %85 = vector.shape_cast %84 : vector<1x64x16xf32> to vector<64x16xf32>
    %86 = vector.extract_strided_slice %6 {offsets = [3, 0, 0], sizes = [1, 128, 16], strides = [1, 1, 1]} : vector<4x128x16xf32> to vector<1x128x16xf32>
    %87 = vector.shape_cast %86 : vector<1x128x16xf32> to vector<128x16xf32>
    %cst_33 = arith.constant dense<0.000000e+00> : vector<64x128xf32>
    %88 = tpu.matmul %85, %87, %cst_33 {dimension_numbers = #tpu.dot_dimension_numbers<[1], [1], [0], [0], [0, 0, 1, 0], [], []>} : vector<64x16xf32>, vector<128x16xf32>, vector<64x128xf32> -> vector<64x128xf32>
    %cst_34 = arith.constant dense<0xFF800000> : vector<64xf32>
    %89 = vector.multi_reduction <maximumf>, %88, %cst_34 [1] : vector<64x128xf32> to vector<64xf32>
    %90 = vector.shape_cast %89 : vector<64xf32> to vector<64x1xf32>
    %91 = vector.broadcast %90 : vector<64x1xf32> to vector<64x128xf32>
    %92 = arith.subf %88, %91 : vector<64x128xf32>
    %93 = math.exp %92 : vector<64x128xf32>
    %cst_35 = arith.constant dense<0.000000e+00> : vector<64xf32>
    %94 = vector.multi_reduction <add>, %93, %cst_35 [1] : vector<64x128xf32> to vector<64xf32>
    %95 = vector.shape_cast %94 : vector<64xf32> to vector<64x1xf32>
    %96 = tpu.reciprocal %95 {approx = true} : vector<64x1xf32> -> vector<64x1xf32>
    %97 = arith.mulf %95, %96 : vector<64x1xf32>
    %cst_36 = arith.constant 2.000000e+00 : f32
    %98 = vector.broadcast %cst_36 : f32 to vector<64x1xf32>
    %99 = arith.subf %98, %97 : vector<64x1xf32>
    %100 = arith.mulf %96, %99 : vector<64x1xf32>
    %101 = vector.broadcast %100 : vector<64x1xf32> to vector<64x128xf32>
    %102 = arith.mulf %93, %101 : vector<64x128xf32>
    %103 = vector.extract_strided_slice %8 {offsets = [3, 0, 0], sizes = [1, 128, 16], strides = [1, 1, 1]} : vector<4x128x16xf32> to vector<1x128x16xf32>
    %104 = vector.shape_cast %103 : vector<1x128x16xf32> to vector<128x16xf32>
    %cst_37 = arith.constant dense<0.000000e+00> : vector<64x16xf32>
    %105 = tpu.matmul %102, %104, %cst_37 {dimension_numbers = #tpu.dot_dimension_numbers<[1], [0], [0], [1], [0, 0, 1, 1], [], []>} : vector<64x128xf32>, vector<128x16xf32>, vector<64x16xf32> -> vector<64x16xf32>
    %c0_38 = arith.constant 0 : index
    %c0_39 = arith.constant 0 : index
    %c48 = arith.constant 48 : index
    %106 = vector.load %arg6[%c0_38, %c0_39, %c48] : memref<1x64x64xf32, #tpu.memory_space<vmem>>, vector<1x64x16xf32>
    %107 = vector.shape_cast %106 : vector<1x64x16xf32> to vector<64x16xf32>
    %108 = vector.shape_cast %105 : vector<64x16xf32> to vector<1x64x16xf32>
    tpu.vector_store %arg6[%c0_38, %c0_39, %c48], %108 {strides = array<i32>} : memref<1x64x64xf32, #tpu.memory_space<vmem>>, vector<1x64x16xf32>,
    return
  }
  func.func @transform_0(%arg0: i32, %arg1: i32) -> i32 {
    %c0_i32 = arith.constant 0 : i32
    %c0_i32_0 = arith.constant 0 : i32
    return %c0_i32 : i32
  }
  func.func @transform_1(%arg0: i32, %arg1: i32) -> (i32, i32, i32, i32) {
    %c0_i32 = arith.constant 0 : i32
    %c0_i32_0 = arith.constant 0 : i32
    %c0_i32_1 = arith.constant 0 : i32
    return %arg0, %c0_i32, %arg1, %c0_i32_0 : i32, i32, i32, i32
  }
  func.func @transform_2(%arg0: i32, %arg1: i32) -> (i32, i32, i32, i32) {
    %c0_i32 = arith.constant 0 : i32
    %c0_i32_0 = arith.constant 0 : i32
    %c0_i32_1 = arith.constant 0 : i32
    %c0_i32_2 = arith.constant 0 : i32
    return %arg0, %c0_i32, %c0_i32_0, %c0_i32_1 : i32, i32, i32, i32
  }
  func.func @transform_3(%arg0: i32, %arg1: i32) -> (i32, i32, i32, i32) {
    %c0_i32 = arith.constant 0 : i32
    %c0_i32_0 = arith.constant 0 : i32
    %c0_i32_1 = arith.constant 0 : i32
    %c0_i32_2 = arith.constant 0 : i32
    return %arg0, %c0_i32, %c0_i32_0, %c0_i32_1 : i32, i32, i32, i32
  }
  func.func @transform_4(%arg0: i32, %arg1: i32) -> (i32, i32, i32) {
    %c0_i32 = arith.constant 0 : i32
    %c0_i32_0 = arith.constant 0 : i32
    return %arg0, %arg1, %c0_i32 : i32, i32, i32
  }
}

</mosaic_0001>

<bundles_post_ra>
// kernel: tpu_custom_call.1
= control target key start
LH: loop header
LB: loop body
LE: loop exit
PB: predicated region body
PF: predicated region fallthrough
CT: control target
= control target key end

     0   :  { %s3103_s0 = inlined_call_operand.<no memory space> [shape: f32[1], index: 0, kind: input, shape index: {}]   ;;  %s3104_s1 = inlined_call_operand.vmem [shape: f32[2,4,128,16], index: 1, kind: input, shape index: {}]   ;;  %s3105_s2 = inlined_call_operand.vmem [shape: f32[2,4,128,16], index: 2, kind: input, shape index: {}]   ;;  %s3106_s3 = inlined_call_operand.vmem [shape: f32[2,4,128,16], index: 3, kind: input, shape index: {}]   ;;  %s3107_s4 = inlined_call_operand.vmem [shape: f32[2,128,64], index: 4, kind: output, shape index: {}]  }
   0x1   :  { %9 = sst [smem:[#allocation2]] %s3103_s0 }
   0x2   :  { %s2293_s17 = smov 0   ;;  %s2295_s18 = smov 0  }
   0x3   :  { %s2297_s19 = smov 0   ;;  %s2299_s20 = smov 0  }
   0x4   :  { %s2301_s21 = smov 0   ;;  %s2303_s22 = smov 0  }
   0x5   :  { %s2305_s23 = smov 0  }
   0x6 LB: > { %s24_s0 = sadd.s32 1, %s2252_s21  ;;  %s27_s24 = sadd.s32 1, %s2256_s22  ;;  %s2260_s23 = sphi %s2305_s23, %s15_s23   ;;  %s2256_s22 = sphi %s2303_s22, %s3113_s22   ;;  %s2252_s21 = sphi %s2301_s21, %s3112_s21   ;;  %s2248_s20 = sphi %s2299_s20, %s3111_s20   ;;  %s2244_s19 = sphi %s2297_s19, %s3110_s19   ;;  %s2240_s18 = sphi %s2295_s18, %s3109_s18   ;;  %s2236_s17 = sphi %s2293_s17, %s3108_s17  }
   0x7   : > { %p25_p0 = scmp.ge.s32.totalorder %s24_s0, 2  ;;  %p64_p1 = scmp.ne.s32.totalorder %s2240_s18, %s2236_s17 }
   0x8   : > { %p65_p2 = scmp.eq.s32.totalorder %s2260_s23, 0  ;;  %s57_s28 = sadd.s32 1, %s2240_s18 }
   0x9   : > { %s3115_s0 = smov (%p25_p0, %s24_s0), 0  ;;  %s3117_s24 = smov (!%p25_p0, %s27_s24), %s2256_s22 }
   0xa   : > { %p66_p3 = por %p65_p2, %p64_p1  ;;  %p29_p4 = scmp.ge.s32.totalorder %s3117_s24, 2 }
   0xb   : > { %s53_s25 = ssub.s32 %s2252_s21, %s3115_s0  ;;  %p1873_p6 = scmp.ge.s32.totalorder %s2260_s23, 4 }
   0xc   : > { %s3119_s24 = smov (%p29_p4, %s3117_s24), 0 }
   0xd   : > { %s52_s26 = ssub.s32 %s2256_s22, %s3119_s24  ;;  %173 = sbr.rel (%p1873_p6) target bundleno = 57 (0x39), region = 20 }
   0xe   : > { %s54_s27 = sor.u32 %s53_s25, %s52_s26 }
   0xf   : > { %p55_p5 = scmp.eq.s32.totalorder %s54_s27, 0 }
  0x11   : > { %s2344_s29 = scalar_select %p55_p5, %s2240_s18, %s57_s28  }
  0x12   : > { %176 = sbr.rel (!%p66_p3) target bundleno = 57 (0x39), region = 24  ;;  %s178_s30 = sand.u32 (%p66_p3), 1, %s2240_s18  }
  0x13   : > { %s1875_s5 = sshll.u32 (%p66_p3), %s2252_s21, 3  ;;  %s1874_s6 = sshll.u32 (%p66_p3), %s178_s30, 8 }
  0x14   : > { %s1876_s7 = sshll.u32 (%p66_p3), %s2256_s22, 6  ;;  %s2358_s13 = scalar_lea.vmem (%p66_p3), [#allocation3], %s1874_s6 }
  0x15   : > { %s183_s8 = sadd.s32 (%p66_p3), %s1876_s7, %s1875_s5 }
  0x16   : > { %s1877_s9 = sshll.u32 (%p66_p3), %s183_s8, 3 }
  0x17   : > { %s2353_s12 = scalar_lea.vmem %s3104_s1, %s1877_s9 }
  0x18   : > { %v276_v0 = vld [vmem:[%s2353_s12] sm:$0xff]  ;;  %v278_v1 = vld [vmem:[%s2353_s12 + $0x8] sm:$0xff]  ;;  %v280_v2 = vld [vmem:[%s2353_s12 + $0x10] sm:$0xff] }
  0x19   : > { %277 = vst [vmem:[%s2358_s13] sm:$0xff] %v276_v0  ;;  %v282_v3 = vld [vmem:[%s2353_s12 + $0x18] sm:$0xff]  ;;  %v284_v4 = vld [vmem:[%s2353_s12 + $0x20] sm:$0xff]  ;;  %v286_v5 = vld [vmem:[%s2353_s12 + $0x28] sm:$0xff] }
  0x1a   : > { %279 = vst [vmem:[%s2358_s13 + $0x8] sm:$0xff] %v278_v1  ;;  %v288_v6 = vld [vmem:[%s2353_s12 + $0x30] sm:$0xff]  ;;  %v290_v7 = vld [vmem:[%s2353_s12 + $0x38] sm:$0xff]  ;;  %v292_v8 = vld [vmem:[%s2353_s12 + $0x80] sm:$0xff] }
  0x1b   : > { %281 = vst [vmem:[%s2358_s13 + $0x10] sm:$0xff] %v280_v2  ;;  %v294_v9 = vld [vmem:[%s2353_s12 + $0x88] sm:$0xff]  ;;  %v296_v10 = vld [vmem:[%s2353_s12 + $0x90] sm:$0xff]  ;;  %v298_v11 = vld [vmem:[%s2353_s12 + $0x98] sm:$0xff] }
  0x1c   : > { %283 = vst [vmem:[%s2358_s13 + $0x18] sm:$0xff] %v282_v3  ;;  %v300_v12 = vld [vmem:[%s2353_s12 + $0xa0] sm:$0xff]  ;;  %v302_v13 = vld [vmem:[%s2353_s12 + $0xa8] sm:$0xff]  ;;  %v304_v14 = vld [vmem:[%s2353_s12 + $0xb0] sm:$0xff] }
  0x1d   : > { %285 = vst [vmem:[%s2358_s13 + $0x20] sm:$0xff] %v284_v4  ;;  %v306_v15 = vld [vmem:[%s2353_s12 + $0xb8] sm:$0xff]  ;;  %v308_v16 = vld [vmem:[%s2353_s12 + $0x100] sm:$0xff]  ;;  %v310_v17 = vld [vmem:[%s2353_s12 + $0x108] sm:$0xff] }
  0x1e   : > { %287 = vst [vmem:[%s2358_s13 + $0x28] sm:$0xff] %v286_v5  ;;  %v312_v18 = vld [vmem:[%s2353_s12 + $0x110] sm:$0xff]  ;;  %v314_v19 = vld [vmem:[%s2353_s12 + $0x118] sm:$0xff]  ;;  %v316_v20 = vld [vmem:[%s2353_s12 + $0x120] sm:$0xff] }
  0x1f   : > { %289 = vst [vmem:[%s2358_s13 + $0x30] sm:$0xff] %v288_v6  ;;  %v318_v21 = vld [vmem:[%s2353_s12 + $0x128] sm:$0xff]  ;;  %v320_v22 = vld [vmem:[%s2353_s12 + $0x130] sm:$0xff]  ;;  %v322_v23 = vld [vmem:[%s2353_s12 + $0x138] sm:$0xff] }
  0x20   : > { %291 = vst [vmem:[%s2358_s13 + $0x38] sm:$0xff] %v290_v7  ;;  %v324_v24 = vld [vmem:[%s2353_s12 + $0x180] sm:$0xff]  ;;  %v326_v25 = vld [vmem:[%s2353_s12 + $0x188] sm:$0xff]  ;;  %v328_v26 = vld [vmem:[%s2353_s12 + $0x190] sm:$0xff] }
  0x21   : > { %293 = vst [vmem:[%s2358_s13 + $0x40] sm:$0xff] %v292_v8  ;;  %v330_v27 = vld [vmem:[%s2353_s12 + $0x198] sm:$0xff]  ;;  %v332_v28 = vld [vmem:[%s2353_s12 + $0x1a0] sm:$0xff]  ;;  %v334_v29 = vld [vmem:[%s2353_s12 + $0x1a8] sm:$0xff] }
  0x22   : > { %295 = vst [vmem:[%s2358_s13 + $0x48] sm:$0xff] %v294_v9  ;;  %v336_v30 = vld [vmem:[%s2353_s12 + $0x1b0] sm:$0xff]  ;;  %v338_v31 = vld [vmem:[%s2353_s12 + $0x1b8] sm:$0xff] }
  0x23   : > { %297 = vst [vmem:[%s2358_s13 + $0x50] sm:$0xff] %v296_v10 }
  0x24   : > { %299 = vst [vmem:[%s2358_s13 + $0x58] sm:$0xff] %v298_v11 }
  0x25   : > { %301 = vst [vmem:[%s2358_s13 + $0x60] sm:$0xff] %v300_v12 }
  0x26   : > { %303 = vst [vmem:[%s2358_s13 + $0x68] sm:$0xff] %v302_v13 }
  0x27   : > { %305 = vst [vmem:[%s2358_s13 + $0x70] sm:$0xff] %v304_v14 }
  0x28   : > { %307 = vst [vmem:[%s2358_s13 + $0x78] sm:$0xff] %v306_v15 }
  0x29   : > { %309 = vst [vmem:[%s2358_s13 + $0x80] sm:$0xff] %v308_v16 }
  0x2a   : > { %311 = vst [vmem:[%s2358_s13 + $0x88] sm:$0xff] %v310_v17 }
  0x2b   : > { %313 = vst [vmem:[%s2358_s13 + $0x90] sm:$0xff] %v312_v18 }
  0x2c   : > { %315 = vst [vmem:[%s2358_s13 + $0x98] sm:$0xff] %v314_v19 }
  0x2d   : > { %317 = vst [vmem:[%s2358_s13 + $0xa0] sm:$0xff] %v316_v20 }
  0x2e   : > { %319 = vst [vmem:[%s2358_s13 + $0xa8] sm:$0xff] %v318_v21 }
  0x2f   : > { %321 = vst [vmem:[%s2358_s13 + $0xb0] sm:$0xff] %v320_v22 }
  0x30   : > { %323 = vst [vmem:[%s2358_s13 + $0xb8] sm:$0xff] %v322_v23 }
  0x31   : > { %325 = vst [vmem:[%s2358_s13 + $0xc0] sm:$0xff] %v324_v24 }
  0x32   : > { %327 = vst [vmem:[%s2358_s13 + $0xc8] sm:$0xff] %v326_v25 }
  0x33   : > { %329 = vst [vmem:[%s2358_s13 + $0xd0] sm:$0xff] %v328_v26 }
  0x34   : > { %331 = vst [vmem:[%s2358_s13 + $0xd8] sm:$0xff] %v330_v27 }
  0x35   : > { %333 = vst [vmem:[%s2358_s13 + $0xe0] sm:$0xff] %v332_v28 }
  0x36   : > { %335 = vst [vmem:[%s2358_s13 + $0xe8] sm:$0xff] %v334_v29 }
  0x37   : > { %337 = vst [vmem:[%s2358_s13 + $0xf0] sm:$0xff] %v336_v30 }
  0x38   : > { %339 = vst [vmem:[%s2358_s13 + $0xf8] sm:$0xff] %v338_v31 }
  0x39 PF: > { %p1878_p7 = scmp.ge.s32.totalorder %s2260_s23, 1  ;;  %p360_p8 = scmp.lt.s32.totalorder %s2260_s23, 5 }
  0x3b   : > { %p361_p9 = pnand %p1878_p7, %p360_p8 }
  0x3c   : > { %p407_p10 = scmp.lt.s32.totalorder (!%p361_p9), %s2248_s20, 1  ;;  %s367_s26 = sand.u32 (!%p361_p9), 1, %s2236_s17  }
  0x3d   : > { %364 = sbr.rel (%p361_p9) target bundleno = 1311 (0x51f), region = 70  ;;  %s427_s27 = sld [smem:[#allocation2]] (!%p361_p9) }
  0x3e   : > { %s1879_s28 = sshll.u32 (!%p361_p9), %s367_s26, 8  ;;  %s1884_s7 = sshll.u32 (!%p361_p9), %s2244_s19, 3 }
  0x3f   : > { %s2466_s30 = scalar_lea.vmem (!%p361_p9), [#allocation3], %s1879_s28  ;;  %p420_p11 = scmp.lt.s32.totalorder (!%p361_p9), %s1884_s7, 15 }
  0x40   : > { %s2262_s12 = smov (!%p361_p9), 16   ;;  %s2263_s13 = smov (!%p361_p9), 48  }
  0x42   : > { %s3121_s20 = smov (!%p407_p10, %s2248_s20), 1  ;;  %vm621_vm0 = vcmask 130048   ;;  %v428_v47 = vld [vmem:[%s2466_s30] sm:$0xff]  ;;  %v429_v51 = vld [vmem:[%s2466_s30 + $0x8] sm:$0xff]  ;;  %v430_v53 = vld [vmem:[%s2466_s30 + $0x10] sm:$0xff]  ;;  %s3123_s7 = smov (!%p420_p11, %s1884_s7), 15 }
  0x43   : > { %s1985_s14 = sshll.u32 %s3121_s20, 9  ;;  %v2469_v48 = vstv %s427_s27  ;;  %v431_v55 = vld [vmem:[%s2466_s30 + $0x18] sm:$0xff]  ;;  %v432_v58 = vld [vmem:[%s2466_s30 + $0x20] sm:$0xff]  ;;  %v433_v62 = vld [vmem:[%s2466_s30 + $0x28] sm:$0xff]  ;;  %s1885_s8 = sshll.u32 %s3121_s20, 4  ;;  %vm1162_vm1 = vcmask 261248  }
  0x44   : > { %s2433_s25 = scalar_lea.vmem %s3105_s2, %s1985_s14  ;;  %v461_v50 = vmul.f32 %v2469_v48, %v428_v47  ;;  %v462_v52 = vmul.f32 %v2469_v48, %v429_v51  ;;  %v463_v54 = vmul.f32 %v2469_v48, %v430_v53  ;;  %v464_v56 = vmul.f32 %v2469_v48, %v431_v55  ;;  %v434_v2 = vld [vmem:[%s2466_s30 + $0x30] sm:$0xff]  ;;  %v435_v4 = vld [vmem:[%s2466_s30 + $0x38] sm:$0xff]  ;;  %v436_v19 = vld [vmem:[%s2466_s30 + $0x40] sm:$0xff]  ;;  %s2574_s6 = scalar_lea.vmem %s3106_s3, %s1985_s14 }
  0x45   : > { %v508_v32 = vld [vmem:[%s2433_s25 + $0x78] sm:$0xff]  ;;  %v507_v33 = vld [vmem:[%s2433_s25 + $0x70] sm:$0xff]  ;;  %v506_v34 = vld [vmem:[%s2433_s25 + $0x68] sm:$0xff]  ;;  %v465_v60 = vmul.f32 %v2469_v48, %v432_v58  ;;  %v466_v0 = vmul.f32 %v2469_v48, %v433_v62  ;;  %v467_v3 = vmul.f32 %v2469_v48, %v434_v2  ;;  %v468_v5 = vmul.f32 %v2469_v48, %v435_v4  ;;  %s423_s19 = sadd.s32 %s1885_s8, %s3123_s7  ;;  %s2264_s14 = smov 32  }
  0x46   : > { %1887 = vmatpush.xpose.msk.msra.mxu0 %vm621_vm0, %v508_v32  ;;  %v505_v35 = vld [vmem:[%s2433_s25 + $0x60] sm:$0xff]  ;;  %v504_v36 = vld [vmem:[%s2433_s25 + $0x58] sm:$0xff]  ;;  %v503_v37 = vld [vmem:[%s2433_s25 + $0x50] sm:$0xff]  ;;  %v469_v20 = vmul.f32 %v2469_v48, %v436_v19  ;;  %s1886_s9 = sshll.u32 %s423_s19, 3  ;;  %vm1453_vm2 = vcmask 392448   ;;  %vm1744_vm3 = vcmask 523648  }
  0x47   : > { %v502_v38 = vld [vmem:[%s2433_s25 + $0x48] sm:$0xff]  ;;  %v501_v39 = vld [vmem:[%s2433_s25 + $0x40] sm:$0xff]  ;;  %v500_v40 = vld [vmem:[%s2433_s25 + $0x38] sm:$0xff]  ;;  %s2818_s11 = scalar_lea.vmem %s3107_s4, %s1886_s9 }
  0x48   : > { %v499_v41 = vld [vmem:[%s2433_s25 + $0x30] sm:$0xff]  ;;  %v498_v42 = vld [vmem:[%s2433_s25 + $0x28] sm:$0xff]  ;;  %v497_v43 = vld [vmem:[%s2433_s25 + $0x20] sm:$0xff] }
  0x49   : > { %v496_v44 = vld [vmem:[%s2433_s25 + $0x18] sm:$0xff]  ;;  %v495_v45 = vld [vmem:[%s2433_s25 + $0x10] sm:$0xff]  ;;  %v494_v46 = vld [vmem:[%s2433_s25 + $0x8] sm:$0xff] }
  0x4a   : > { %1888 = vmatpush.xpose.msk.msra.mxu0 %vm621_vm0, %v507_v33  ;;  %v493_v49 = vld [vmem:[%s2433_s25] sm:$0xff]  ;;  %v524_v57 = vld [vmem:[%s2433_s25 + $0xf8] sm:$0xff]  ;;  %v523_v59 = vld [vmem:[%s2433_s25 + $0xf0] sm:$0xff] }
  0x4b   : > { %1911 = vmatpush.xpose.msk.msra.mxu2 %vm621_vm0, %v524_v57  ;;  %v522_v61 = vld [vmem:[%s2433_s25 + $0xe8] sm:$0xff]  ;;  %v521_v63 = vld [vmem:[%s2433_s25 + $0xe0] sm:$0xff]  ;;  %v520_v1 = vld [vmem:[%s2433_s25 + $0xd8] sm:$0xff] }
  0x4c   : > { %v519_v6 = vld [vmem:[%s2433_s25 + $0xd0] sm:$0xff]  ;;  %v518_v7 = vld [vmem:[%s2433_s25 + $0xc8] sm:$0xff]  ;;  %v517_v8 = vld [vmem:[%s2433_s25 + $0xc0] sm:$0xff] }
  0x4d   : > { %v516_v9 = vld [vmem:[%s2433_s25 + $0xb8] sm:$0xff]  ;;  %v515_v10 = vld [vmem:[%s2433_s25 + $0xb0] sm:$0xff]  ;;  %v514_v11 = vld [vmem:[%s2433_s25 + $0xa8] sm:$0xff] }
  0x4e   : > { %1889 = vmatpush.xpose.msk.msra.mxu0 %vm621_vm0, %v506_v34  ;;  %v513_v12 = vld [vmem:[%s2433_s25 + $0xa0] sm:$0xff]  ;;  %v512_v13 = vld [vmem:[%s2433_s25 + $0x98] sm:$0xff]  ;;  %v511_v15 = vld [vmem:[%s2433_s25 + $0x90] sm:$0xff] }
  0x4f   : > { %1912 = vmatpush.xpose.msk.msra.mxu2 %vm621_vm0, %v523_v59  ;;  %v510_v16 = vld [vmem:[%s2433_s25 + $0x88] sm:$0xff]  ;;  %v509_v18 = vld [vmem:[%s2433_s25 + $0x80] sm:$0xff]  ;;  %v438_v25 = vld [vmem:[%s2466_s30 + $0x50] sm:$0xff] }
  0x50   : > { %v437_v22 = vld [vmem:[%s2466_s30 + $0x48] sm:$0xff]  ;;  %v471_v26 = vmul.f32 %v2469_v48, %v438_v25  ;;  %v439_v27 = vld [vmem:[%s2466_s30 + $0x58] sm:$0xff]  ;;  %v440_v30 = vld [vmem:[%s2466_s30 + $0x60] sm:$0xff] }
  0x51   : > { %v470_v23 = vmul.f32 %v2469_v48, %v437_v22  ;;  %v472_v29 = vmul.f32 %v2469_v48, %v439_v27  ;;  %v473_v32 = vmul.f32 %v2469_v48, %v440_v30  ;;  %v443_v55 = vld [vmem:[%s2466_s30 + $0x78] sm:$0xff]  ;;  %v562_v25 = vld [vmem:[%s2574_s6 + $0x28] sm:$0xff]  ;;  %v557_v30 = vld [vmem:[%s2574_s6] sm:$0xff] }
  0x52   : > { %1890 = vmatpush.xpose.msk.msra.mxu0 %vm621_vm0, %v505_v35  ;;  %v572_v2 = vld [vmem:[%s2574_s6 + $0x78] sm:$0xff] }
  0x53   : > { %1913 = vmatpush.xpose.msk.msra.mxu2 %vm621_vm0, %v522_v61  ;;  %831 = vmatpush.msra.mxu1 %v572_v2  ;;  %v560_v27 = vld [vmem:[%s2574_s6 + $0x18] sm:$0xff]  ;;  %v530_v2 = vld [vmem:[%s2433_s25 + $0x128] sm:$0xff] }
  0x56   : > { %1891 = vmatpush.xpose.msk.msra.mxu0 %vm621_vm0, %v504_v36 }
  0x57   : > { %1914 = vmatpush.xpose.msk.msra.mxu2 %vm621_vm0, %v521_v63 }
  0x5a   : > { %1892 = vmatpush.xpose.msk.msra.mxu0 %vm621_vm0, %v503_v37 }
  0x5b   : > { %1915 = vmatpush.xpose.msk.msra.mxu2 %vm621_vm0, %v520_v1 }
  0x5e   : > { %1893 = vmatpush.xpose.msk.msra.mxu0 %vm621_vm0, %v502_v38 }
  0x5f   : > { %1916 = vmatpush.xpose.msk.msra.mxu2 %vm621_vm0, %v519_v6 }
  0x62   : > { %1894 = vmatpush.xpose.msk.msra.mxu0 %vm621_vm0, %v501_v39 }
  0x63   : > { %1917 = vmatpush.xpose.msk.msra.mxu2 %vm621_vm0, %v518_v7  ;;  %v569_v7 = vld [vmem:[%s2574_s6 + $0x60] sm:$0xff] }
  0x66   : > { %1895 = vmatpush.xpose.msk.msra.mxu0 %vm621_vm0, %v500_v40 }
  0x67   : > { %1918 = vmatpush.xpose.msk.msra.mxu2 %vm621_vm0, %v517_v8 }
  0x6a   : > { %1896 = vmatpush.xpose.msk.msra.mxu0 %vm621_vm0, %v499_v41 }
  0x6b   : > { %1919 = vmatpush.xpose.msk.msra.mxu2 %vm621_vm0, %v516_v9  ;;  %v568_v9 = vld [vmem:[%s2574_s6 + $0x58] sm:$0xff] }
  0x6e   : > { %1897 = vmatpush.xpose.msk.msra.mxu0 %vm621_vm0, %v498_v42  ;;  %v441_v42 = vld [vmem:[%s2466_s30 + $0x68] sm:$0xff] }
  0x6f   : > { %1920 = vmatpush.xpose.msk.msra.mxu2 %vm621_vm0, %v515_v10 }
  0x72   : > { %1898 = vmatpush.xpose.msk.msra.mxu0 %vm621_vm0, %v497_v43  ;;  %v474_v43 = vmul.f32 %v2469_v48, %v441_v42  ;;  %v534_v42 = vld [vmem:[%s2433_s25 + $0x148] sm:$0xff] }
  0x73   : > { %1921 = vmatpush.xpose.msk.msra.mxu2 %vm621_vm0, %v514_v11 }
  0x76   : > { %1899 = vmatpush.xpose.msk.msra.mxu0 %vm621_vm0, %v496_v44 }
  0x77   : > { %1922 = vmatpush.xpose.msk.msra.mxu2 %vm621_vm0, %v513_v12  ;;  %v567_v12 = vld [vmem:[%s2574_s6 + $0x50] sm:$0xff] }
  0x7a   : > { %1900 = vmatpush.xpose.msk.msra.mxu0 %vm621_vm0, %v495_v45 }
  0x7b   : > { %1923 = vmatpush.xpose.msk.msra.mxu2 %vm621_vm0, %v512_v13  ;;  %v566_v13 = vld [vmem:[%s2574_s6 + $0x48] sm:$0xff] }
  0x7e   : > { %1901 = vmatpush.xpose.msk.msra.mxu0 %vm621_vm0, %v494_v46 }
  0x7f   : > { %1924 = vmatpush.xpose.msk.msra.mxu2 %vm621_vm0, %v511_v15 }
  0x82   : > { %1902 = vmatpush.xpose.msk.msra.mxu0 %vm621_vm0, %v493_v49  ;;  %v442_v49 = vld [vmem:[%s2466_s30 + $0x70] sm:$0xff] }
  0x83   : > { %1925 = vmatpush.xpose.msk.msra.mxu2 %vm621_vm0, %v510_v16  ;;  %v565_v16 = vld [vmem:[%s2574_s6 + $0x40] sm:$0xff] }
  0x85   : > { %1903 = vmatmul.msk.f32.vlgmr.msra.gmra.mxu0 %vm621_vm0, %v461_v50  ;;  %v475_v50 = vmul.f32 %v2469_v48, %v442_v49 }
  0x87   : > { %1926 = vmatpush.xpose.msk.msra.mxu2 %vm621_vm0, %v509_v18 }
  0x8a   : > { %1927 = vmatmul.msk.f32.vlgmr.msra.gmra.mxu2 %vm621_vm0, %v469_v20 }
  0x8d   : > { %1904 = vmatmul.msk.f32.gmra.mxu0 %vm621_vm0, %v462_v52 }
  0x92   : > { %1928 = vmatmul.msk.f32.gmra.mxu2 %vm621_vm0, %v470_v23  ;;  %v564_v23 = vld [vmem:[%s2574_s6 + $0x38] sm:$0xff] }
  0x95   : > { %1905 = vmatmul.msk.f32.gmra.mxu0 %vm621_vm0, %v463_v54 }
  0x9a   : > { %1929 = vmatmul.msk.f32.gmra.mxu2 %vm621_vm0, %v471_v26  ;;  %v561_v26 = vld [vmem:[%s2574_s6 + $0x20] sm:$0xff] }
  0x9d   : > { %1906 = vmatmul.msk.f32.gmra.mxu0 %vm621_vm0, %v464_v56  ;;  %v476_v56 = vmul.f32 %v2469_v48, %v443_v55 }
  0xa2   : > { %1930 = vmatmul.msk.f32.gmra.mxu2 %vm621_vm0, %v472_v29  ;;  %v558_v29 = vld [vmem:[%s2574_s6 + $0x8] sm:$0xff] }
  0xa5   : > { %1907 = vmatmul.msk.f32.gmra.mxu0 %vm621_vm0, %v465_v60 }
  0xaa   : > { %1931 = vmatmul.msk.f32.gmra.mxu2 %vm621_vm0, %v473_v32  ;;  %v539_v32 = vld [vmem:[%s2433_s25 + $0x170] sm:$0xff] }
  0xad   : > { %1908 = vmatmul.msk.f32.gmra.mxu0 %vm621_vm0, %v466_v0 }
  0xb2   : > { %1932 = vmatmul.msk.f32.gmra.mxu2 %vm621_vm0, %v474_v43 }
  0xb5   : > { %1909 = vmatmul.msk.f32.gmra.mxu0 %vm621_vm0, %v467_v3  ;;  %v571_v3 = vld [vmem:[%s2574_s6 + $0x70] sm:$0xff] }
  0xb6   : > { %832 = vmatpush.msra.mxu1 %v571_v3  ;;  %v2655_v3 = vld [vmem:[%s2433_s25 + $0x1e8] sm:$0xff] }
  0xba   : > { %1933 = vmatmul.msk.f32.gmra.mxu2 %vm621_vm0, %v475_v50 }
  0xbd   : > { %1910 = vmatmul.msk.f32.gmra.mxu0 %vm621_vm0, %v468_v5  ;;  %v570_v5 = vld [vmem:[%s2574_s6 + $0x68] sm:$0xff] }
  0xbe   : > { %833 = vmatpush.msra.mxu1 %v570_v5 }
  0xc0   : > { %834 = vmatpush.msra.mxu1 %v569_v7 }
  0xc2   : > { %1934 = vmatmul.msk.f32.gmra.mxu2 %vm621_vm0, %v476_v56  ;;  %835 = vmatpush.msra.mxu1 %v568_v9 }
  0xc4   : > { %836 = vmatpush.msra.mxu1 %v567_v12 }
  0xc6   : > { %837 = vmatpush.msra.mxu1 %v566_v13 }
  0xc8   : > { %838 = vmatpush.msra.mxu1 %v565_v16  ;;  %v2673_v16 = vld [vmem:[%s2433_s25 + $0x1d8] sm:$0xff] }
  0xca   : > { %839 = vmatpush.msra.mxu1 %v564_v23 }
 0x102   : > { %v711_v14 = vpop.f32.mrf.mxu0 }
 0x103   : > { %735 = vmax.xlane.f32.xlu0 %v711_v14 }
 0x10a   : > { %v714_v17 = vpop.f32.mrf.mxu0 }
 0x10b   : > { %737 = vmax.xlane.f32.xlu0 %v714_v17 }
 0x10d   : > { %v2566_v61 = vpop.f32.mrf.mxu2 }
 0x112   : > { %v717_v21 = vpop.f32.mrf.mxu0 }
 0x113   : > { %739 = vmax.xlane.f32.xlu1 %v717_v21 }
 0x115   : > { %v2581_v4 = vpop.f32.mrf.mxu2 }
 0x11a   : > { %v720_v24 = vpop.f32.mrf.mxu0 }
 0x11b   : > { %741 = vmax.xlane.f32.xlu1 %v720_v24 }
 0x122   : > { %v723_v28 = vpop.f32.mrf.mxu0 }
 0x123   : > { %743 = vmax.xlane.f32.xlu2 %v723_v28 }
 0x12a   : > { %v726_v31 = vpop.f32.mrf.mxu0 }
 0x12b   : > { %745 = vmax.xlane.f32.xlu2 %v726_v31 }
 0x132   : > { %v729_v33 = vpop.f32.mrf.mxu0 }
 0x133   : > { %747 = vmax.xlane.f32.xlu0 %v729_v33 }
 0x13a   : > { %v2543_v34 = vpop.f32.mrf.mxu0 }
 0x13b   : > { %749 = vmax.xlane.f32.xlu2 %v2543_v34 }
 0x176   : > { %v736_v35 = vpop.xlane.xlu0 %735 }
 0x177   : > { %v751_v36 = vsub.f32 %v711_v14, %v736_v35  ;;  %v2591_v14 = vpop.f32.mrf.mxu2 }
 0x179   : > { %v759_v37 = vmul.f32 1.442695, %v751_v36  ;;  %v536_v36 = vld [vmem:[%s2433_s25 + $0x158] sm:$0xff] }
 0x17b   : > { %2078 = vpow2.f32 %v759_v37  ;;  %v535_v37 = vld [vmem:[%s2433_s25 + $0x150] sm:$0xff] }
 0x17e   : > { %v738_v38 = vpop.xlane.xlu0 %737 }
 0x17f   : > { %v752_v39 = vsub.f32 %v714_v17, %v738_v38  ;;  %v2599_v20 = vpop.f32.mrf.mxu2 }
 0x181   : > { %v2546_v40 = vpop.eup %2078  ;;  %v761_v41 = vmul.f32 1.442695, %v752_v39 }
 0x182   : > { %775 = vadd.xlane.f32.xlu1 %v2546_v40 }
 0x183   : > { %2080 = vpow2.f32 %v761_v41 }
 0x186   : > { %v740_v44 = vpop.xlane.xlu1 %739 }
 0x187   : > { %v753_v45 = vsub.f32 %v717_v21, %v740_v44  ;;  %v2606_v22 = vpop.f32.mrf.mxu2 }
 0x189   : > { %v2552_v46 = vpop.eup %2080  ;;  %v763_v47 = vmul.f32 1.442695, %v753_v45  ;;  %v533_v45 = vld [vmem:[%s2433_s25 + $0x140] sm:$0xff] }
 0x18a   : > { %777 = vadd.xlane.f32.xlu0 %v2552_v46 }
 0x18b   : > { %2082 = vpow2.f32 %v763_v47 }
 0x18e   : > { %v742_v51 = vpop.xlane.xlu1 %741 }
 0x18f   : > { %v754_v52 = vsub.f32 %v720_v24, %v742_v51  ;;  %v563_v24 = vld [vmem:[%s2574_s6 + $0x30] sm:$0xff]  ;;  %v2642_v56 = vpop.f32.mrf.mxu2 }
 0x190   : > { %840 = vmatpush.msra.mxu1 %v563_v24  ;;  %v2682_v24 = vld [vmem:[%s2433_s25 + $0x1d0] sm:$0xff] }
 0x191   : > { %v2558_v53 = vpop.eup %2082  ;;  %v765_v54 = vmul.f32 1.442695, %v754_v52  ;;  %v532_v52 = vld [vmem:[%s2433_s25 + $0x138] sm:$0xff] }
 0x192   : > { %779 = vadd.xlane.f32.xlu1 %v2558_v53  ;;  %841 = vmatpush.msra.mxu1 %v562_v25 }
 0x193   : > { %2084 = vpow2.f32 %v765_v54  ;;  %v2637_v54 = vld [vmem:[%s2433_s25 + $0x1f8] sm:$0xff] }
 0x194   : > { %842 = vmatpush.msra.mxu1 %v561_v26  ;;  %1959 = vmatpush.xpose.msk.msrb.mxu0 %vm621_vm0, %v2637_v54 }
 0x196   : > { %v744_v57 = vpop.xlane.xlu2 %743  ;;  %843 = vmatpush.msra.mxu1 %v560_v27 }
 0x197   : > { %v755_v58 = vsub.f32 %v723_v28, %v744_v57  ;;  %v559_v28 = vld [vmem:[%s2574_s6 + $0x10] sm:$0xff] }
 0x198   : > { %844 = vmatpush.msra.mxu1 %v559_v28 }
 0x199   : > { %v2564_v59 = vpop.eup %2084  ;;  %v767_v60 = vmul.f32 1.442695, %v755_v58  ;;  %v2646_v58 = vld [vmem:[%s2433_s25 + $0x1f0] sm:$0xff] }
 0x19a   : > { %781 = vadd.xlane.f32.xlu2 %v2564_v59  ;;  %845 = vmatpush.msra.mxu1 %v558_v29  ;;  %v526_v29 = vld [vmem:[%s2433_s25 + $0x108] sm:$0xff] }
 0x19b   : > { %2086 = vpow2.f32 %v767_v60  ;;  %1960 = vmatpush.xpose.msk.msrb.mxu0 %vm621_vm0, %v2646_v58 }
 0x19c   : > { %846 = vmatpush.msra.mxu1 %v557_v30  ;;  %v2691_v30 = vld [vmem:[%s2433_s25 + $0x1c8] sm:$0xff] }
 0x19e   : > { %v746_v62 = vpop.xlane.xlu2 %745 }
 0x19f   : > { %v756_v63 = vsub.f32 %v726_v31, %v746_v62  ;;  %v540_v31 = vld [vmem:[%s2433_s25 + $0x178] sm:$0xff]  ;;  %1961 = vmatpush.xpose.msk.msrb.mxu0 %vm621_vm0, %v2655_v3 }
 0x1a0   : > { %1935 = vmatpush.xpose.msk.msrb.mxu1 %vm621_vm0, %v540_v31 }
 0x1a1   : > { %v2576_v0 = vpop.eup %2086  ;;  %v769_v1 = vmul.f32 1.442695, %v756_v63 }
 0x1a2   : > { %783 = vadd.xlane.f32.xlu0 %v2576_v0 }
 0x1a3   : > { %2088 = vpow2.f32 %v769_v1 }
 0x1a4   : > { %1936 = vmatpush.xpose.msk.msrb.mxu1 %vm621_vm0, %v539_v32  ;;  %v525_v32 = vld [vmem:[%s2433_s25 + $0x100] sm:$0xff] }
 0x1a6   : > { %v748_v6 = vpop.xlane.xlu0 %747 }
 0x1a7   : > { %v757_v8 = vsub.f32 %v729_v33, %v748_v6  ;;  %v538_v33 = vld [vmem:[%s2433_s25 + $0x168] sm:$0xff]  ;;  %v2660_v6 = vpop.f32.mrf.mxu2 }
 0x1a8   : > { %1937 = vmatpush.xpose.msk.msrb.mxu1 %vm621_vm0, %v538_v33  ;;  %v2698_v33 = vld [vmem:[%s2433_s25 + $0x1c0] sm:$0xff] }
 0x1a9   : > { %v2586_v10 = vpop.eup %2088  ;;  %v771_v11 = vmul.f32 1.442695, %v757_v8  ;;  %v2664_v8 = vld [vmem:[%s2433_s25 + $0x1e0] sm:$0xff] }
 0x1aa   : > { %785 = vadd.xlane.f32.xlu1 %v2586_v10  ;;  %1962 = vmatpush.xpose.msk.msrb.mxu0 %vm621_vm0, %v2664_v8 }
 0x1ab   : > { %2090 = vpow2.f32 %v771_v11 }
 0x1ae   : > { %v750_v15 = vpop.xlane.xlu2 %749  ;;  %1963 = vmatpush.xpose.msk.msrb.mxu0 %vm621_vm0, %v2673_v16 }
 0x1af   : > { %v758_v17 = vsub.f32 %v2543_v34, %v750_v15  ;;  %v537_v34 = vld [vmem:[%s2433_s25 + $0x160] sm:$0xff]  ;;  %v528_v15 = vld [vmem:[%s2433_s25 + $0x118] sm:$0xff] }
 0x1b0   : > { %1938 = vmatpush.xpose.msk.msrb.mxu1 %vm621_vm0, %v537_v34 }
 0x1b1   : > { %v2595_v18 = vpop.eup %2090  ;;  %v773_v19 = vmul.f32 1.442695, %v758_v17 }
 0x1b2   : > { %993 = vmax.xlane.f32.xlu1 %v2566_v61  ;;  %787 = vadd.xlane.f32.xlu2 %v2595_v18 }
 0x1b3   : > { %2092 = vpow2.f32 %v773_v19  ;;  %v2678_v19 = vpop.f32.mrf.mxu2  ;;  %1964 = vmatpush.xpose.msk.msrb.mxu0 %vm621_vm0, %v2682_v24 }
 0x1b4   : > { %1939 = vmatpush.xpose.msk.msrb.mxu1 %vm621_vm0, %v536_v36 }
 0x1b7   : > { %1965 = vmatpush.xpose.msk.msrb.mxu0 %vm621_vm0, %v2691_v30 }
 0x1b8   : > { %1940 = vmatpush.xpose.msk.msrb.mxu1 %vm621_vm0, %v535_v37 }
 0x1b9   : > { %v2601_v21 = vpop.eup %2092 }
 0x1ba   : > { %995 = vmax.xlane.f32.xlu2 %v2581_v4  ;;  %789 = vadd.xlane.f32.xlu0 %v2601_v21 }
 0x1bb   : > { %999 = vmax.xlane.f32.xlu1 %v2599_v20  ;;  %1966 = vmatpush.xpose.msk.msrb.mxu0 %vm621_vm0, %v2698_v33 }
 0x1bc   : > { %1941 = vmatpush.xpose.msk.msrb.mxu1 %vm621_vm0, %v534_v42 }
 0x1c0   : > { %1942 = vmatpush.xpose.msk.msrb.mxu1 %vm621_vm0, %v533_v45 }
 0x1c2   : > { %997 = vmax.xlane.f32.xlu0 %v2591_v14  ;;  %1001 = vmax.xlane.f32.xlu2 %v2606_v22 }
 0x1c3   : > { %1005 = vmax.xlane.f32.xlu1 %v2660_v6 }
 0x1c4   : > { %1943 = vmatpush.xpose.msk.msrb.mxu1 %vm621_vm0, %v532_v52 }
 0x1ca   : > { %1003 = vmax.xlane.f32.xlu0 %v2642_v56 }
 0x1d2   : > { %1007 = vmax.xlane.f32.xlu0 %v2678_v19 }
 0x1f5   : > { %v776_v35 = vpop.xlane.xlu1 %775 }
 0x1f6   : > { %2094 = vrcp.f32 %v776_v35 }
 0x1fc   : > { %v2095_v38 = vpop.eup %2094 }
 0x1fd   : > { %v799_v39 = vmul.f32 %v2095_v38, %v776_v35  ;;  %v778_v41 = vpop.xlane.xlu0 %777 }
 0x1fe   : > { %2096 = vrcp.f32 %v778_v41 }
 0x1ff   : > { %v807_v43 = vsub.f32 2.0, %v799_v39  ;;  %v2707_v39 = vld [vmem:[%s2433_s25 + $0x1b8] sm:$0xff] }
 0x200   : > { %1967 = vmatpush.xpose.msk.msrb.mxu0 %vm621_vm0, %v2707_v39 }
 0x201   : > { %v815_v44 = vmul.f32 %v2095_v38, %v807_v43  ;;  %v547_v43 = vld [vmem:[%s2433_s25 + $0x1b0] sm:$0xff] }
 0x203   : > { %v823_v47 = vmul.f32 %v2546_v40, %v815_v44  ;;  %v531_v40 = vld [vmem:[%s2433_s25 + $0x130] sm:$0xff] }
 0x204   : > { %v2097_v49 = vpop.eup %2096  ;;  %1944 = vmatpush.xpose.msk.msrb.mxu1 %vm621_vm0, %v531_v40  ;;  %1968 = vmatpush.xpose.msk.msrb.mxu0 %vm621_vm0, %v547_v43 }
 0x205   : > { %v800_v50 = vmul.f32 %v2097_v49, %v778_v41  ;;  %847 = vmatmul.f32.vlgmr.msra.gmra.mxu1 %v823_v47  ;;  %v780_v51 = vpop.xlane.xlu1 %779 }
 0x206   : > { %2098 = vrcp.f32 %v780_v51 }
 0x207   : > { %v808_v55 = vsub.f32 2.0, %v800_v50 }
 0x208   : > { %1945 = vmatpush.xpose.msk.msrb.mxu1 %vm621_vm0, %v530_v2 }
 0x209   : > { %v816_v57 = vmul.f32 %v2097_v49, %v808_v55  ;;  %v545_v55 = vld [vmem:[%s2433_s25 + $0x1a0] sm:$0xff] }
 0x20b   : > { %v824_v60 = vmul.f32 %v2552_v46, %v816_v57  ;;  %v529_v46 = vld [vmem:[%s2433_s25 + $0x120] sm:$0xff] }
 0x20c   : > { %v2099_v62 = vpop.eup %2098  ;;  %1946 = vmatpush.xpose.msk.msrb.mxu1 %vm621_vm0, %v529_v46  ;;  %v542_v46 = vld [vmem:[%s2433_s25 + $0x188] sm:$0xff] }
 0x20d   : > { %v801_v63 = vmul.f32 %v2099_v62, %v780_v51  ;;  %850 = vmatmul.f32.gmra.mxu1 %v824_v60  ;;  %v782_v1 = vpop.xlane.xlu2 %781  ;;  %v546_v51 = vld [vmem:[%s2433_s25 + $0x1a8] sm:$0xff] }
 0x20e   : > { %2100 = vrcp.f32 %v782_v1  ;;  %1969 = vmatpush.xpose.msk.msrb.mxu0 %vm621_vm0, %v546_v51 }
 0x20f   : > { %v809_v5 = vsub.f32 2.0, %v801_v63  ;;  %v544_v63 = vld [vmem:[%s2433_s25 + $0x198] sm:$0xff] }
 0x210   : > { %1947 = vmatpush.xpose.msk.msrb.mxu1 %vm621_vm0, %v528_v15  ;;  %v445_v15 = vld [vmem:[%s2466_s30 + $0x88] sm:$0xff] }
 0x211   : > { %v817_v7 = vmul.f32 %v2099_v62, %v809_v5 }
 0x212   : > { %1970 = vmatpush.xpose.msk.msrb.mxu0 %vm621_vm0, %v545_v55 }
 0x213   : > { %v825_v9 = vmul.f32 %v2558_v53, %v817_v7  ;;  %v527_v53 = vld [vmem:[%s2433_s25 + $0x110] sm:$0xff] }
 0x214   : > { %v2101_v11 = vpop.eup %2100  ;;  %1948 = vmatpush.xpose.msk.msrb.mxu1 %vm621_vm0, %v527_v53  ;;  %v446_v53 = vld [vmem:[%s2466_s30 + $0x90] sm:$0xff] }
 0x215   : > { %v802_v12 = vmul.f32 %v2101_v11, %v782_v1  ;;  %853 = vmatmul.f32.gmra.mxu1 %v825_v9  ;;  %v784_v13 = vpop.xlane.xlu0 %783  ;;  %v541_v9 = vld [vmem:[%s2433_s25 + $0x180] sm:$0xff] }
 0x216   : > { %2102 = vrcp.f32 %v784_v13  ;;  %1971 = vmatpush.xpose.msk.msrb.mxu0 %vm621_vm0, %v544_v63 }
 0x217   : > { %v810_v17 = vsub.f32 2.0, %v802_v12  ;;  %v452_v12 = vld [vmem:[%s2466_s30 + $0xc0] sm:$0xff] }
 0x218   : > { %1949 = vmatpush.xpose.msk.msrb.mxu1 %vm621_vm0, %v526_v29  ;;  %v455_v29 = vld [vmem:[%s2466_s30 + $0xd8] sm:$0xff] }
 0x219   : > { %v818_v23 = vmul.f32 %v2101_v11, %v810_v17  ;;  %v453_v17 = vld [vmem:[%s2466_s30 + $0xc8] sm:$0xff] }
 0x21b   : > { %v826_v25 = vmul.f32 %v2564_v59, %v818_v23  ;;  %v486_v23 = vmul.f32 %v2469_v48, %v453_v17 }
 0x21c   : > { %v2103_v26 = vpop.eup %2102  ;;  %1950 = vmatpush.xpose.msk.msrb.mxu1 %vm621_vm0, %v525_v32 }
 0x21d   : > { %v803_v27 = vmul.f32 %v2103_v26, %v784_v13  ;;  %v786_v28 = vpop.xlane.xlu1 %785  ;;  %856 = vmatmul.f32.gmra.mxu1 %v826_v25  ;;  %v485_v13 = vmul.f32 %v2469_v48, %v452_v12  ;;  %v454_v25 = vld [vmem:[%s2466_s30 + $0xd0] sm:$0xff] }
 0x21e   : > { %2104 = vrcp.f32 %v786_v28 }
 0x21f   : > { %v811_v31 = vsub.f32 2.0, %v803_v27  ;;  %v447_v27 = vld [vmem:[%s2466_s30 + $0x98] sm:$0xff] }
 0x220   : > { %1987 = vmatpush.xpose.msk.msra.mxu1 %vm621_vm0, %v2637_v54 }
 0x221   : > { %v819_v59 = vmul.f32 %v2103_v26, %v811_v31  ;;  %v487_v26 = vmul.f32 %v2469_v48, %v454_v25  ;;  %v448_v31 = vld [vmem:[%s2466_s30 + $0xa0] sm:$0xff] }
 0x222   : > { %v481_v32 = vmul.f32 %v2469_v48, %v448_v31 }
 0x223   : > { %v827_v34 = vmul.f32 %v2576_v0, %v819_v59 }
 0x224   : > { %v2105_v35 = vpop.eup %2104  ;;  %1988 = vmatpush.xpose.msk.msra.mxu1 %vm621_vm0, %v2646_v58 }
 0x225   : > { %v804_v36 = vmul.f32 %v2105_v35, %v786_v28  ;;  %v994_v37 = vpop.xlane.xlu1 %993  ;;  %859 = vmatmul.f32.gmra.mxu1 %v827_v34  ;;  %v788_v38 = vpop.xlane.xlu2 %787  ;;  %v480_v28 = vmul.f32 %v2469_v48, %v447_v27  ;;  %v449_v34 = vld [vmem:[%s2466_s30 + $0xa8] sm:$0xff] }
 0x226   : > { %v1009_v41 = vsub.f32 %v2566_v61, %v994_v37  ;;  %2106 = vrcp.f32 %v788_v38 }
 0x227   : > { %v812_v42 = vsub.f32 2.0, %v804_v36  ;;  %v457_v36 = vld [vmem:[%s2466_s30 + $0xe8] sm:$0xff] }
 0x228   : > { %v1017_v0 = vmul.f32 1.442695, %v1009_v41  ;;  %1989 = vmatpush.xpose.msk.msra.mxu1 %vm621_vm0, %v2655_v3  ;;  %v543_v3 = vld [vmem:[%s2433_s25 + $0x190] sm:$0xff]  ;;  %v490_v37 = vmul.f32 %v2469_v48, %v457_v36  ;;  %v588_v41 = vld [vmem:[%s2574_s6 + $0xf8] sm:$0xff] }
 0x229   : > { %v820_v44 = vmul.f32 %v2105_v35, %v812_v42  ;;  %1972 = vmatpush.xpose.msk.msrb.mxu0 %vm621_vm0, %v543_v3  ;;  %v482_v35 = vmul.f32 %v2469_v48, %v449_v34  ;;  %v587_v42 = vld [vmem:[%s2574_s6 + $0xf0] sm:$0xff]  ;;  %1089 = vmatpush.msra.mxu3 %v588_v41 }
 0x22a   : > { %2108 = vpow2.f32 %v1017_v0  ;;  %v451_v0 = vld [vmem:[%s2466_s30 + $0xb8] sm:$0xff] }
 0x22b   : > { %v828_v45 = vmul.f32 %v2586_v10, %v820_v44  ;;  %1090 = vmatpush.msra.mxu3 %v587_v42  ;;  %v484_v44 = vmul.f32 %v2469_v48, %v451_v0 }
 0x22c   : > { %v2107_v61 = vpop.eup %2106  ;;  %1990 = vmatpush.xpose.msk.msra.mxu1 %vm621_vm0, %v2664_v8  ;;  %v444_v8 = vld [vmem:[%s2466_s30 + $0x80] sm:$0xff] }
 0x22d   : > { %v805_v47 = vmul.f32 %v2107_v61, %v788_v38  ;;  %v790_v49 = vpop.xlane.xlu0 %789  ;;  %862 = vmatmul.f32.gmra.mxu1 %v828_v45  ;;  %v996_v50 = vpop.xlane.xlu2 %995  ;;  %1973 = vmatpush.xpose.msk.msrb.mxu0 %vm621_vm0, %v542_v46  ;;  %v450_v38 = vld [vmem:[%s2466_s30 + $0xb0] sm:$0xff]  ;;  %v585_v45 = vld [vmem:[%s2574_s6 + $0xe0] sm:$0xff] }
 0x22e   : > { %2110 = vrcp.f32 %v790_v49  ;;  %v1010_v52 = vsub.f32 %v2581_v4, %v996_v50  ;;  %v582_v50 = vld [vmem:[%s2574_s6 + $0xc8] sm:$0xff] }
 0x22f   : > { %v813_v54 = vsub.f32 2.0, %v805_v47  ;;  %v583_v47 = vld [vmem:[%s2574_s6 + $0xd0] sm:$0xff] }
 0x230   : > { %v2725_v10 = vpop.eup %2108  ;;  %v1019_v57 = vmul.f32 1.442695, %v1010_v52  ;;  %1991 = vmatpush.xpose.msk.msra.mxu1 %vm621_vm0, %v2673_v16  ;;  %v478_v16 = vmul.f32 %v2469_v48, %v445_v15 }
 0x231   : > { %1033 = vadd.xlane.f32.xlu2 %v2725_v10  ;;  %v821_v40 = vmul.f32 %v2107_v61, %v813_v54  ;;  %1974 = vmatpush.xpose.msk.msrb.mxu0 %vm621_vm0, %v541_v9  ;;  %v584_v61 = vld [vmem:[%s2574_s6 + $0xd8] sm:$0xff]  ;;  %v581_v54 = vld [vmem:[%s2574_s6 + $0xc0] sm:$0xff] }
 0x232   : > { %2112 = vpow2.f32 %v1019_v57  ;;  %v459_v57 = vld [vmem:[%s2466_s30 + $0xf8] sm:$0xff] }
 0x233   : > { %v829_v4 = vmul.f32 %v2595_v18, %v821_v40  ;;  %v579_v40 = vld [vmem:[%s2574_s6 + $0xb0] sm:$0xff] }
 0x234   : > { %v2111_v58 = vpop.eup %2110  ;;  %1992 = vmatpush.xpose.msk.msra.mxu1 %vm621_vm0, %v2682_v24  ;;  %1975 = vmatmul.msk.f32.vlgmr.msrb.gmra.mxu0 %vm621_vm0, %v485_v13  ;;  %v479_v24 = vmul.f32 %v2469_v48, %v446_v53 }
 0x235   : > { %v806_v60 = vmul.f32 %v2111_v58, %v790_v49  ;;  %v998_v62 = vpop.xlane.xlu0 %997  ;;  %865 = vmatmul.f32.gmra.mxu1 %v829_v4  ;;  %v458_v49 = vld [vmem:[%s2466_s30 + $0xf0] sm:$0xff]  ;;  %v578_v4 = vld [vmem:[%s2574_s6 + $0xa8] sm:$0xff] }
 0x236   : > { %v1011_v1 = vsub.f32 %v2591_v14, %v998_v62  ;;  %v577_v62 = vld [vmem:[%s2574_s6 + $0xa0] sm:$0xff] }
 0x237   : > { %v814_v2 = vsub.f32 2.0, %v806_v60 }
 0x238   : > { %v2738_v18 = vpop.eup %2112  ;;  %v1021_v5 = vmul.f32 1.442695, %v1011_v1  ;;  %1993 = vmatpush.xpose.msk.msra.mxu1 %vm621_vm0, %v2691_v30  ;;  %v488_v30 = vmul.f32 %v2469_v48, %v455_v29  ;;  %v575_v1 = vld [vmem:[%s2574_s6 + $0x90] sm:$0xff] }
 0x239   : > { %1035 = vadd.xlane.f32.xlu1 %v2738_v18  ;;  %v822_v7 = vmul.f32 %v2111_v58, %v814_v2  ;;  %v492_v58 = vmul.f32 %v2469_v48, %v459_v57  ;;  %v574_v2 = vld [vmem:[%s2574_s6 + $0x88] sm:$0xff] }
 0x23a   : > { %2114 = vpow2.f32 %v1021_v5  ;;  %v573_v5 = vld [vmem:[%s2574_s6 + $0x80] sm:$0xff] }
 0x23b   : > { %v830_v14 = vmul.f32 %v2601_v21, %v822_v7  ;;  %v477_v21 = vmul.f32 %v2469_v48, %v444_v8 }
 0x23c   : > { %1994 = vmatpush.xpose.msk.msra.mxu1 %vm621_vm0, %v2698_v33  ;;  %1976 = vmatmul.msk.f32.gmra.mxu0 %vm621_vm0, %v486_v23  ;;  %v456_v33 = vld [vmem:[%s2466_s30 + $0xe0] sm:$0xff] }
 0x23d   : > { %868 = vmatmul.f32.gmra.mxu1 %v830_v14  ;;  %v489_v59 = vmul.f32 %v2469_v48, %v456_v33  ;;  %v1002_v14 = vpop.xlane.xlu2 %1001 }
 0x240   : > { %v2751_v11 = vpop.eup %2114  ;;  %1995 = vmatpush.xpose.msk.msra.mxu1 %vm621_vm0, %v2707_v39  ;;  %v483_v39 = vmul.f32 %v2469_v48, %v450_v38 }
 0x241   : > { %1037 = vadd.xlane.f32.xlu0 %v2751_v11 }
 0x244   : > { %1996 = vmatpush.xpose.msk.msra.mxu1 %vm621_vm0, %v547_v43  ;;  %1977 = vmatmul.msk.f32.gmra.mxu0 %vm621_vm0, %v487_v26  ;;  %v586_v43 = vld [vmem:[%s2574_s6 + $0xe8] sm:$0xff] }
 0x245   : > { %1951 = vmatmul.msk.f32.vlgmr.msrb.gmra.mxu1 %vm621_vm0, %v477_v21  ;;  %1091 = vmatpush.msra.mxu3 %v586_v43 }
 0x247   : > { %1092 = vmatpush.msra.mxu3 %v585_v45 }
 0x248   : > { %1997 = vmatpush.xpose.msk.msra.mxu1 %vm621_vm0, %v546_v51  ;;  %v491_v51 = vmul.f32 %v2469_v48, %v458_v49  ;;  %v1000_v48 = vpop.xlane.xlu1 %999 }
 0x249   : > { %1093 = vmatpush.msra.mxu3 %v584_v61 }
 0x24b   : > { %1094 = vmatpush.msra.mxu3 %v583_v47 }
 0x24c   : > { %1998 = vmatpush.xpose.msk.msra.mxu1 %vm621_vm0, %v545_v55  ;;  %1978 = vmatmul.msk.f32.gmra.mxu0 %vm621_vm0, %v488_v30  ;;  %v580_v55 = vld [vmem:[%s2574_s6 + $0xb8] sm:$0xff] }
 0x24d   : > { %1952 = vmatmul.msk.f32.gmra.mxu1 %vm621_vm0, %v478_v16  ;;  %1095 = vmatpush.msra.mxu3 %v582_v50 }
 0x24f   : > { %1096 = vmatpush.msra.mxu3 %v581_v54 }
 0x250   : > { %1999 = vmatpush.xpose.msk.msra.mxu1 %vm621_vm0, %v544_v63  ;;  %v576_v63 = vld [vmem:[%s2574_s6 + $0x98] sm:$0xff] }
 0x251   : > { %1097 = vmatpush.msra.mxu3 %v580_v55 }
 0x253   : > { %1098 = vmatpush.msra.mxu3 %v579_v40 }
 0x254   : > { %2000 = vmatpush.xpose.msk.msra.mxu1 %vm621_vm0, %v543_v3  ;;  %1979 = vmatmul.msk.f32.gmra.mxu0 %vm621_vm0, %v489_v59  ;;  %v1012_v59 = vsub.f32 %v2599_v20, %v1000_v48 }
 0x255   : > { %1953 = vmatmul.msk.f32.gmra.mxu1 %vm621_vm0, %v479_v24  ;;  %1099 = vmatpush.msra.mxu3 %v578_v4 }
 0x257   : > { %1100 = vmatpush.msra.mxu3 %v577_v62 }
 0x258   : > { %2001 = vmatpush.xpose.msk.msra.mxu1 %vm621_vm0, %v542_v46  ;;  %v1004_v46 = vpop.xlane.xlu0 %1003 }
 0x259   : > { %1101 = vmatpush.msra.mxu3 %v576_v63  ;;  %v1014_v20 = vsub.f32 %v2642_v56, %v1004_v46 }
 0x25b   : > { %1102 = vmatpush.msra.mxu3 %v575_v1  ;;  %v1027_v43 = vmul.f32 1.442695, %v1014_v20 }
 0x25c   : > { %2002 = vmatpush.xpose.msk.msra.mxu1 %vm621_vm0, %v541_v9  ;;  %1980 = vmatmul.msk.f32.gmra.mxu0 %vm621_vm0, %v490_v37  ;;  %v1006_v9 = vpop.xlane.xlu1 %1005 }
 0x25d   : > { %1954 = vmatmul.msk.f32.gmra.mxu1 %vm621_vm0, %v480_v28  ;;  %1103 = vmatpush.msra.mxu3 %v574_v2 }
 0x25f   : > { %1104 = vmatpush.msra.mxu3 %v573_v5 }
 0x260   : > { %v1008_v13 = vpop.xlane.xlu0 %1007 }
 0x261   : > { %v1016_v56 = vsub.f32 %v2678_v19, %v1008_v13 }
 0x263   : > { %v1031_v49 = vmul.f32 1.442695, %v1016_v56 }
 0x265   : > { %1955 = vmatmul.msk.f32.gmra.mxu1 %vm621_vm0, %v481_v32 }
 0x26d   : > { %1956 = vmatmul.msk.f32.gmra.mxu1 %vm621_vm0, %v482_v35  ;;  %v1023_v35 = vmul.f32 1.442695, %v1012_v59 }
 0x275   : > { %1957 = vmatmul.msk.f32.gmra.mxu1 %vm621_vm0, %v483_v39  ;;  %v1013_v39 = vsub.f32 %v2606_v22, %v1002_v14  ;;  %v1015_v22 = vsub.f32 %v2660_v6, %v1006_v9 }
 0x277   : > { %v1025_v41 = vmul.f32 1.442695, %v1013_v39  ;;  %v1029_v45 = vmul.f32 1.442695, %v1015_v22 }
 0x27d   : > { %1958 = vmatmul.msk.f32.gmra.mxu1 %vm621_vm0, %v484_v44 }
 0x282   : > { %v848_v52 = vpop.f32.mrf.mxu1 }
 0x283   : > { %872 = vst.msk [vmem:[%s2818_s11] sm:$0xff] %vm621_vm0, %v848_v52 }
 0x285   : > { %1981 = vmatmul.msk.f32.vlgmr.msra.gmra.mxu1 %vm621_vm0, %v491_v51 }
 0x28a   : > { %v851_v60 = vpop.f32.mrf.mxu1 }
 0x28b   : > { %873 = vst.msk [vmem:[%s2818_s11 + $0x8] sm:$0xff] %vm621_vm0, %v851_v60 }
 0x28d   : > { %1982 = vmatmul.msk.f32.gmra.mxu1 %vm621_vm0, %v492_v58 }
 0x292   : > { %v854_v3 = vpop.f32.mrf.mxu1 }
 0x293   : > { %874 = vst.msk [vmem:[%s2818_s11 + $0x10] sm:$0xff] %vm621_vm0, %v854_v3 }
 0x29a   : > { %v857_v7 = vpop.f32.mrf.mxu1 }
 0x29b   : > { %875 = vst.msk [vmem:[%s2818_s11 + $0x18] sm:$0xff] %vm621_vm0, %v857_v7 }
 0x2a2   : > { %v860_v8 = vpop.f32.mrf.mxu1 }
 0x2a3   : > { %876 = vst.msk [vmem:[%s2818_s11 + $0x20] sm:$0xff] %vm621_vm0, %v860_v8 }
 0x2a4   : > { %v1034_v21 = vpop.xlane.xlu2 %1033 }
 0x2a5   : > { %2116 = vrcp.f32 %v1034_v21 }
 0x2aa   : > { %v863_v12 = vpop.f32.mrf.mxu1 }
 0x2ab   : > { %v2117_v15 = vpop.eup %2116  ;;  %877 = vst.msk [vmem:[%s2818_s11 + $0x28] sm:$0xff] %vm621_vm0, %v863_v12 }
 0x2ac   : > { %v1057_v16 = vmul.f32 %v2117_v15, %v1034_v21  ;;  %v1036_v17 = vpop.xlane.xlu1 %1035 }
 0x2ad   : > { %2118 = vrcp.f32 %v1036_v17 }
 0x2ae   : > { %v1065_v23 = vsub.f32 2.0, %v1057_v16 }
 0x2b0   : > { %v1073_v53 = vmul.f32 %v2117_v15, %v1065_v23 }
 0x2b2   : > { %v866_v24 = vpop.f32.mrf.mxu1  ;;  %v1081_v25 = vmul.f32 %v2725_v10, %v1073_v53 }
 0x2b3   : > { %v2119_v26 = vpop.eup %2118  ;;  %878 = vst.msk [vmem:[%s2818_s11 + $0x30] sm:$0xff] %vm621_vm0, %v866_v24 }
 0x2b4   : > { %v1058_v27 = vmul.f32 %v2119_v26, %v1036_v17  ;;  %v1038_v28 = vpop.xlane.xlu0 %1037  ;;  %1105 = vmatmul.f32.vlgmr.msra.gmra.mxu3 %v1081_v25 }
 0x2b5   : > { %2120 = vrcp.f32 %v1038_v28 }
 0x2b6   : > { %v1066_v29 = vsub.f32 2.0, %v1058_v27  ;;  %2122 = vpow2.f32 %v1023_v35 }
 0x2b7   : > { %2124 = vpow2.f32 %v1025_v41 }
 0x2b8   : > { %v1074_v30 = vmul.f32 %v2119_v26, %v1066_v29  ;;  %2126 = vpow2.f32 %v1027_v43 }
 0x2b9   : > { %2128 = vpow2.f32 %v1029_v45 }
 0x2ba   : > { %v869_v31 = vpop.f32.mrf.mxu1  ;;  %v1082_v32 = vmul.f32 %v2738_v18, %v1074_v30  ;;  %2130 = vpow2.f32 %v1031_v49 }
 0x2bb   : > { %v2121_v33 = vpop.eup %2120  ;;  %879 = vst.msk [vmem:[%s2818_s11 + $0x38] sm:$0xff] %vm621_vm0, %v869_v31 }
 0x2bc   : > { %v1059_v34 = vmul.f32 %v2121_v33, %v1038_v28  ;;  %1108 = vmatmul.f32.gmra.mxu3 %v1082_v32  ;;  %v2855_v18 = vpop.eup %2122 }
 0x2bd   : > { %v2859_v0 = vpop.eup %2124 }
 0x2be   : > { %v1067_v10 = vsub.f32 2.0, %v1059_v34  ;;  %v2865_v61 = vpop.eup %2126 }
 0x2bf   : > { %v2874_v51 = vpop.eup %2128 }
 0x2c0   : > { %v1075_v36 = vmul.f32 %v2121_v33, %v1067_v10  ;;  %v2881_v52 = vpop.eup %2130 }
 0x2c2   : > { %v1260_v37 = vpop.f32.mrf.mxu1  ;;  %v1083_v38 = vmul.f32 %v2751_v11, %v1075_v36  ;;  %v2863_v11 = vpop.f32.mrf.mxu0 }
 0x2c3   : > { %1284 = vmax.xlane.f32.xlu2 %v1260_v37 }
 0x2c4   : > { %1111 = vmatmul.f32.gmra.mxu3 %v1083_v38 }
 0x2ca   : > { %v1263_v42 = vpop.f32.mrf.mxu1  ;;  %v2872_v50 = vpop.f32.mrf.mxu0 }
 0x2cb   : > { %1039 = vadd.xlane.f32.xlu2 %v2855_v18  ;;  %1286 = vmax.xlane.f32.xlu1 %v1263_v42 }
 0x2d2   : > { %v1266_v44 = vpop.f32.mrf.mxu1  ;;  %v2885_v55 = vpop.f32.mrf.mxu0 }
 0x2d3   : > { %1288 = vmax.xlane.f32.xlu0 %v1266_v44  ;;  %1041 = vadd.xlane.f32.xlu1 %v2859_v0 }
 0x2da   : > { %v2867_v47 = vpop.f32.mrf.mxu1  ;;  %v2894_v57 = vpop.f32.mrf.mxu0 }
 0x2db   : > { %1043 = vadd.xlane.f32.xlu0 %v2865_v61  ;;  %1290 = vmax.xlane.f32.xlu2 %v2867_v47 }
 0x2e2   : > { %v2876_v6 = vpop.f32.mrf.mxu1  ;;  %v2900_v4 = vpop.f32.mrf.mxu0 }
 0x2e3   : > { %1045 = vadd.xlane.f32.xlu0 %v2874_v51  ;;  %1292 = vmax.xlane.f32.xlu1 %v2876_v6 }
 0x2e4   : > { %1575 = vmax.xlane.f32.xlu2 %v2863_v11 }
 0x2ea   : > { %v2883_v54 = vpop.f32.mrf.mxu1  ;;  %v2906_v60 = vpop.f32.mrf.mxu0 }
 0x2eb   : > { %1047 = vadd.xlane.f32.xlu0 %v2881_v52  ;;  %1294 = vmax.xlane.f32.xlu1 %v2883_v54 }
 0x2ec   : > { %1577 = vmax.xlane.f32.xlu2 %v2872_v50 }
 0x2f2   : > { %v2890_v19 = vpop.f32.mrf.mxu1 }
 0x2f3   : > { %1296 = vmax.xlane.f32.xlu1 %v2890_v19 }
 0x2f4   : > { %1579 = vmax.xlane.f32.xlu2 %v2885_v55 }
 0x2fa   : > { %v2896_v40 = vpop.f32.mrf.mxu1 }
 0x2fb   : > { %1298 = vmax.xlane.f32.xlu1 %v2896_v40 }
 0x2fc   : > { %1581 = vmax.xlane.f32.xlu2 %v2894_v57 }
 0x302   : > { %v2902_v58 = vpop.f32.mrf.mxu1 }
 0x303   : > { %1583 = vmax.xlane.f32.xlu1 %v2900_v4 }
 0x304   : > { %1587 = vmax.xlane.f32.xlu2 %v2902_v58 }
 0x30a   : > { %v2908_v62 = vpop.f32.mrf.mxu1 }
 0x30b   : > { %1585 = vmax.xlane.f32.xlu1 %v2906_v60 }
 0x30c   : > { %1589 = vmax.xlane.f32.xlu2 %v2908_v62 }
 0x336   : > { %v1285_v63 = vpop.xlane.xlu2 %1284 }
 0x337   : > { %v1300_v1 = vsub.f32 %v1260_v37, %v1285_v63 }
 0x339   : > { %v1308_v2 = vmul.f32 1.442695, %v1300_v1 }
 0x33b   : > { %2132 = vpow2.f32 %v1308_v2 }
 0x33e   : > { %v1287_v3 = vpop.xlane.xlu1 %1286  ;;  %v1040_v5 = vpop.xlane.xlu2 %1039 }
 0x33f   : > { %v1301_v48 = vsub.f32 %v1263_v42, %v1287_v3  ;;  %2134 = vrcp.f32 %v1040_v5 }
 0x341   : > { %v2912_v7 = vpop.eup %2132  ;;  %v1310_v14 = vmul.f32 1.442695, %v1301_v48 }
 0x342   : > { %1324 = vadd.xlane.f32.xlu0 %v2912_v7 }
 0x343   : > { %2136 = vpow2.f32 %v1310_v14 }
 0x345   : > { %v2135_v46 = vpop.eup %2134 }
 0x346   : > { %v1060_v8 = vmul.f32 %v2135_v46, %v1040_v5  ;;  %v1289_v9 = vpop.xlane.xlu0 %1288  ;;  %v1042_v21 = vpop.xlane.xlu1 %1041 }
 0x347   : > { %v1302_v12 = vsub.f32 %v1266_v44, %v1289_v9  ;;  %2138 = vrcp.f32 %v1042_v21 }
 0x348   : > { %v1068_v13 = vsub.f32 2.0, %v1060_v8 }
 0x349   : > { %v2915_v15 = vpop.eup %2136  ;;  %v1312_v16 = vmul.f32 1.442695, %v1302_v12 }
 0x34a   : > { %1326 = vadd.xlane.f32.xlu0 %v2915_v15  ;;  %v1076_v17 = vmul.f32 %v2135_v46, %v1068_v13 }
 0x34b   : > { %2140 = vpow2.f32 %v1312_v16 }
 0x34c   : > { %v1084_v23 = vmul.f32 %v2855_v18, %v1076_v17 }
 0x34d   : > { %v2139_v53 = vpop.eup %2138 }
 0x34e   : > { %v1061_v24 = vmul.f32 %v2139_v53, %v1042_v21  ;;  %v1044_v25 = vpop.xlane.xlu0 %1043  ;;  %1114 = vmatmul.f32.gmra.mxu3 %v1084_v23  ;;  %v1291_v26 = vpop.xlane.xlu2 %1290 }
 0x34f   : > { %2142 = vrcp.f32 %v1044_v25  ;;  %v1303_v27 = vsub.f32 %v2867_v47, %v1291_v26 }
 0x350   : > { %v1069_v28 = vsub.f32 2.0, %v1061_v24 }
 0x351   : > { %v2920_v29 = vpop.eup %2140  ;;  %v1314_v30 = vmul.f32 1.442695, %v1303_v27 }
 0x352   : > { %1328 = vadd.xlane.f32.xlu0 %v2920_v29  ;;  %v1077_v31 = vmul.f32 %v2139_v53, %v1069_v28 }
 0x353   : > { %2144 = vpow2.f32 %v1314_v30 }
 0x354   : > { %v1085_v32 = vmul.f32 %v2859_v0, %v1077_v31 }
 0x355   : > { %v2143_v33 = vpop.eup %2142 }
 0x356   : > { %v1062_v59 = vmul.f32 %v2143_v33, %v1044_v25  ;;  %v1046_v34 = vpop.xlane.xlu0 %1045  ;;  %v1293_v10 = vpop.xlane.xlu1 %1292  ;;  %1117 = vmatmul.f32.gmra.mxu3 %v1085_v32  ;;  %v604_v32 = vld [vmem:[%s2574_s6 + $0x178] sm:$0xff] }
 0x357   : > { %2146 = vrcp.f32 %v1046_v34  ;;  %v1304_v35 = vsub.f32 %v2876_v6, %v1293_v10  ;;  %v1576_v36 = vpop.xlane.xlu2 %1575  ;;  %1380 = vmatpush.msrb.mxu3 %v604_v32  ;;  %v605_v32 = vld [vmem:[%s2574_s6 + $0x180] sm:$0xff] }
 0x358   : > { %v1070_v37 = vsub.f32 2.0, %v1062_v59  ;;  %v1591_v38 = vsub.f32 %v2863_v11, %v1576_v36  ;;  %v603_v59 = vld [vmem:[%s2574_s6 + $0x170] sm:$0xff] }
 0x359   : > { %v2926_v39 = vpop.eup %2144  ;;  %v1316_v41 = vmul.f32 1.442695, %v1304_v35  ;;  %1381 = vmatpush.msrb.mxu3 %v603_v59 }
 0x35a   : > { %v1599_v18 = vmul.f32 1.442695, %v1591_v38  ;;  %1330 = vadd.xlane.f32.xlu0 %v2926_v39  ;;  %v1078_v42 = vmul.f32 %v2143_v33, %v1070_v37  ;;  %v602_v38 = vld [vmem:[%s2574_s6 + $0x168] sm:$0xff] }
 0x35b   : > { %2148 = vpow2.f32 %v1316_v41  ;;  %v620_v41 = vld [vmem:[%s2574_s6 + $0x1f8] sm:$0xff]  ;;  %1382 = vmatpush.msrb.mxu3 %v602_v38 }
 0x35c   : > { %2150 = vpow2.f32 %v1599_v18  ;;  %v1086_v20 = vmul.f32 %v2865_v61, %v1078_v42  ;;  %1671 = vmatpush.msrb.mxu2 %v620_v41  ;;  %v600_v18 = vld [vmem:[%s2574_s6 + $0x158] sm:$0xff]  ;;  %v618_v42 = vld [vmem:[%s2574_s6 + $0x1e8] sm:$0xff] }
 0x35d   : > { %v2147_v43 = vpop.eup %2146 }
 0x35e   : > { %v1063_v0 = vmul.f32 %v2147_v43, %v1046_v34  ;;  %v1048_v44 = vpop.xlane.xlu0 %1047  ;;  %v1295_v22 = vpop.xlane.xlu1 %1294  ;;  %1120 = vmatmul.f32.gmra.mxu3 %v1086_v20  ;;  %v599_v20 = vld [vmem:[%s2574_s6 + $0x150] sm:$0xff] }
 0x35f   : > { %2152 = vrcp.f32 %v1048_v44  ;;  %v1305_v45 = vsub.f32 %v2883_v54, %v1295_v22  ;;  %v1578_v11 = vpop.xlane.xlu2 %1577  ;;  %v616_v22 = vld [vmem:[%s2574_s6 + $0x1d8] sm:$0xff] }
 0x360   : > { %v1071_v47 = vsub.f32 2.0, %v1063_v0  ;;  %v1592_v56 = vsub.f32 %v2872_v50, %v1578_v11  ;;  %v598_v0 = vld [vmem:[%s2574_s6 + $0x148] sm:$0xff]  ;;  %v1106_v11 = vpop.f32.mrf.mxu3 }
 0x361   : > { %v2932_v49 = vpop.eup %2148  ;;  %v1318_v6 = vmul.f32 1.442695, %v1305_v45 }
 0x362   : > { %v2934_v63 = vpop.eup %2150  ;;  %v1601_v1 = vmul.f32 1.442695, %v1592_v56  ;;  %1332 = vadd.xlane.f32.xlu1 %v2932_v49  ;;  %v1079_v61 = vmul.f32 %v2147_v43, %v1071_v47  ;;  %v617_v43 = vld [vmem:[%s2574_s6 + $0x1e0] sm:$0xff] }
 0x363   : > { %2154 = vpow2.f32 %v1318_v6  ;;  %1615 = vadd.xlane.f32.xlu2 %v2934_v63  ;;  %v597_v47 = vld [vmem:[%s2574_s6 + $0x140] sm:$0xff]  ;;  %v596_v6 = vld [vmem:[%s2574_s6 + $0x138] sm:$0xff] }
 0x364   : > { %2156 = vpow2.f32 %v1601_v1  ;;  %v1087_v2 = vmul.f32 %v2874_v51, %v1079_v61  ;;  %v595_v1 = vld [vmem:[%s2574_s6 + $0x130] sm:$0xff]  ;;  %v594_v61 = vld [vmem:[%s2574_s6 + $0x128] sm:$0xff] }
 0x365   : > { %v2153_v54 = vpop.eup %2152 }
 0x366   : > { %v1064_v3 = vmul.f32 %v2153_v54, %v1048_v44  ;;  %v1297_v5 = vpop.xlane.xlu1 %1296  ;;  %1123 = vmatmul.f32.gmra.mxu3 %v1087_v2  ;;  %v593_v2 = vld [vmem:[%s2574_s6 + $0x120] sm:$0xff] }
 0x367   : > { %v1306_v50 = vsub.f32 %v2890_v19, %v1297_v5  ;;  %v1580_v48 = vpop.xlane.xlu2 %1579  ;;  %v591_v5 = vld [vmem:[%s2574_s6 + $0x110] sm:$0xff] }
 0x368   : > { %v1072_v14 = vsub.f32 2.0, %v1064_v3  ;;  %v1593_v46 = vsub.f32 %v2885_v55, %v1580_v48  ;;  %v1109_v56 = vpop.f32.mrf.mxu3  ;;  %v592_v3 = vld [vmem:[%s2574_s6 + $0x118] sm:$0xff]  ;;  %v614_v48 = vld [vmem:[%s2574_s6 + $0x1c8] sm:$0xff] }
 0x369   : > { %v2941_v8 = vpop.eup %2154  ;;  %v1320_v9 = vmul.f32 1.442695, %v1306_v50  ;;  %v615_v50 = vld [vmem:[%s2574_s6 + $0x1d0] sm:$0xff] }
 0x36a   : > { %v2943_v21 = vpop.eup %2156  ;;  %v1603_v12 = vmul.f32 1.442695, %v1593_v46  ;;  %1334 = vadd.xlane.f32.xlu0 %v2941_v8  ;;  %v1080_v13 = vmul.f32 %v2153_v54, %v1072_v14  ;;  %v590_v14 = vld [vmem:[%s2574_s6 + $0x108] sm:$0xff]  ;;  %v589_v46 = vld [vmem:[%s2574_s6 + $0x100] sm:$0xff] }
 0x36b   : > { %2158 = vpow2.f32 %v1320_v9  ;;  %1617 = vadd.xlane.f32.xlu1 %v2943_v21  ;;  %v613_v9 = vld [vmem:[%s2574_s6 + $0x1c0] sm:$0xff] }
 0x36c   : > { %2160 = vpow2.f32 %v1603_v12  ;;  %v1088_v51 = vmul.f32 %v2881_v52, %v1080_v13  ;;  %v612_v12 = vld [vmem:[%s2574_s6 + $0x1b8] sm:$0xff]  ;;  %v611_v13 = vld [vmem:[%s2574_s6 + $0x1b0] sm:$0xff] }
 0x36e   : > { %v1299_v19 = vpop.xlane.xlu1 %1298  ;;  %1126 = vmatmul.f32.gmra.mxu3 %v1088_v51  ;;  %v610_v51 = vld [vmem:[%s2574_s6 + $0x1a8] sm:$0xff] }
 0x36f   : > { %v1307_v16 = vsub.f32 %v2896_v40, %v1299_v19  ;;  %v1582_v55 = vpop.xlane.xlu2 %1581 }
 0x370   : > { %v1594_v17 = vsub.f32 %v2894_v57, %v1582_v55  ;;  %v1112_v54 = vpop.f32.mrf.mxu3  ;;  %v608_v55 = vld [vmem:[%s2574_s6 + $0x198] sm:$0xff] }
 0x371   : > { %v2950_v23 = vpop.eup %2158  ;;  %v1322_v53 = vmul.f32 1.442695, %v1307_v16  ;;  %v609_v16 = vld [vmem:[%s2574_s6 + $0x1a0] sm:$0xff] }
 0x372   : > { %v2952_v24 = vpop.eup %2160  ;;  %v1605_v25 = vmul.f32 1.442695, %v1594_v17  ;;  %1336 = vadd.xlane.f32.xlu2 %v2950_v23 }
 0x373   : > { %2162 = vpow2.f32 %v1322_v53  ;;  %1619 = vadd.xlane.f32.xlu0 %v2952_v24 }
 0x374   : > { %2164 = vpow2.f32 %v1605_v25 }
 0x376   : > { %v1584_v52 = vpop.xlane.xlu1 %1583 }
 0x377   : > { %v1588_v26 = vpop.xlane.xlu2 %1587  ;;  %v1595_v40 = vsub.f32 %v2900_v4, %v1584_v52 }
 0x378   : > { %v1597_v57 = vsub.f32 %v2902_v58, %v1588_v26  ;;  %v607_v26 = vld [vmem:[%s2574_s6 + $0x190] sm:$0xff] }
 0x379   : > { %v2958_v27 = vpop.eup %2162  ;;  %v1607_v28 = vmul.f32 1.442695, %v1595_v40 }
 0x37a   : > { %v2960_v30 = vpop.eup %2164  ;;  %v1611_v31 = vmul.f32 1.442695, %v1597_v57  ;;  %1338 = vadd.xlane.f32.xlu1 %v2958_v27  ;;  %v606_v57 = vld [vmem:[%s2574_s6 + $0x188] sm:$0xff] }
 0x37b   : > { %2166 = vpow2.f32 %v1607_v28  ;;  %1621 = vadd.xlane.f32.xlu2 %v2960_v30 }
 0x37c   : > { %2168 = vpow2.f32 %v1611_v31 }
 0x37e   : > { %v1586_v4 = vpop.xlane.xlu1 %1585 }
 0x37f   : > { %v1590_v33 = vpop.xlane.xlu2 %1589  ;;  %v1596_v58 = vsub.f32 %v2906_v60, %v1586_v4  ;;  %v601_v60 = vld [vmem:[%s2574_s6 + $0x160] sm:$0xff] }
 0x380   : > { %v1598_v34 = vsub.f32 %v2908_v62, %v1590_v33  ;;  %v619_v62 = vld [vmem:[%s2574_s6 + $0x1f0] sm:$0xff]  ;;  %1383 = vmatpush.msrb.mxu3 %v601_v60 }
 0x381   : > { %v2968_v10 = vpop.eup %2166  ;;  %v1609_v35 = vmul.f32 1.442695, %v1596_v58  ;;  %1672 = vmatpush.msrb.mxu2 %v619_v62 }
 0x382   : > { %v2970_v36 = vpop.eup %2168  ;;  %v1613_v37 = vmul.f32 1.442695, %v1598_v34  ;;  %1623 = vadd.xlane.f32.xlu0 %v2968_v10  ;;  %1384 = vmatpush.msrb.mxu3 %v600_v18 }
 0x383   : > { %2170 = vpow2.f32 %v1609_v35  ;;  %1627 = vadd.xlane.f32.xlu1 %v2970_v36  ;;  %1673 = vmatpush.msrb.mxu2 %v618_v42 }
 0x384   : > { %2172 = vpow2.f32 %v1613_v37  ;;  %1385 = vmatpush.msrb.mxu3 %v599_v20 }
 0x385   : > { %1674 = vmatpush.msrb.mxu2 %v617_v43 }
 0x386   : > { %1386 = vmatpush.msrb.mxu3 %v598_v0 }
 0x387   : > { %1675 = vmatpush.msrb.mxu2 %v616_v22 }
 0x388   : > { %1387 = vmatpush.msrb.mxu3 %v597_v47 }
 0x389   : > { %v2983_v44 = vpop.eup %2170  ;;  %1676 = vmatpush.msrb.mxu2 %v615_v50 }
 0x38a   : > { %v2986_v45 = vpop.eup %2172  ;;  %1625 = vadd.xlane.f32.xlu2 %v2983_v44  ;;  %1388 = vmatpush.msrb.mxu3 %v596_v6 }
 0x38b   : > { %1629 = vadd.xlane.f32.xlu0 %v2986_v45  ;;  %1677 = vmatpush.msrb.mxu2 %v614_v48 }
 0x38c   : > { %1389 = vmatpush.msrb.mxu3 %v595_v1 }
 0x38d   : > { %1678 = vmatpush.msrb.mxu2 %v613_v9 }
 0x38e   : > { %1390 = vmatpush.msrb.mxu3 %v594_v61 }
 0x38f   : > { %1679 = vmatpush.msrb.mxu2 %v612_v12 }
 0x390   : > { %1391 = vmatpush.msrb.mxu3 %v593_v2 }
 0x391   : > { %1680 = vmatpush.msrb.mxu2 %v611_v13 }
 0x392   : > { %1392 = vmatpush.msrb.mxu3 %v592_v3 }
 0x393   : > { %1681 = vmatpush.msrb.mxu2 %v610_v51 }
 0x394   : > { %1393 = vmatpush.msrb.mxu3 %v591_v5 }
 0x395   : > { %1682 = vmatpush.msrb.mxu2 %v609_v16 }
 0x396   : > { %1394 = vmatpush.msrb.mxu3 %v590_v14 }
 0x397   : > { %1683 = vmatpush.msrb.mxu2 %v608_v55 }
 0x398   : > { %1395 = vmatpush.msrb.mxu3 %v589_v46 }
 0x399   : > { %1684 = vmatpush.msrb.mxu2 %v607_v26 }
 0x39a   : > { %2003 = vmatpush.msra.mxu3 %v620_v41 }
 0x39b   : > { %1685 = vmatpush.msrb.mxu2 %v606_v57 }
 0x39c   : > { %1138 = vrot.lane.b32.xlu1 %v1106_v11, %s2262_s12  ;;  %2004 = vmatpush.msra.mxu3 %v619_v62 }
 0x39d   : > { %1686 = vmatpush.msrb.mxu2 %v605_v32 }
 0x39e   : > { %2005 = vmatpush.msra.mxu3 %v618_v42 }
 0x39f   : > { %1142 = vrot.lane.b32.xlu0 %v1112_v54, %s2262_s12 }
 0x3a0   : > { %2006 = vmatpush.msra.mxu3 %v617_v43 }
 0x3a2   : > { %1140 = vrot.lane.b32.xlu2 %v1109_v56, %s2262_s12  ;;  %2007 = vmatpush.msra.mxu3 %v616_v22 }
 0x3a4   : > { %2008 = vmatpush.msra.mxu3 %v615_v50 }
 0x3a6   : > { %2009 = vmatpush.msra.mxu3 %v614_v48 }
 0x3a8   : > { %2010 = vmatpush.msra.mxu3 %v613_v9 }
 0x3aa   : > { %2011 = vmatpush.msra.mxu3 %v612_v12 }
 0x3ac   : > { %2012 = vmatpush.msra.mxu3 %v611_v13 }
 0x3ae   : > { %2013 = vmatpush.msra.mxu3 %v610_v51 }
 0x3b0   : > { %2014 = vmatpush.msra.mxu3 %v609_v16 }
 0x3b2   : > { %2015 = vmatpush.msra.mxu3 %v608_v55 }
 0x3b4   : > { %2016 = vmatpush.msra.mxu3 %v607_v26 }
 0x3b5   : > { %v1325_v19 = vpop.xlane.xlu0 %1324 }
 0x3b6   : > { %2174 = vrcp.f32 %v1325_v19  ;;  %2017 = vmatpush.msra.mxu3 %v606_v57 }
 0x3b8   : > { %2018 = vmatpush.msra.mxu3 %v605_v32 }
 0x3bc   : > { %v2175_v17 = vpop.eup %2174 }
 0x3bd   : > { %v1348_v53 = vmul.f32 %v2175_v17, %v1325_v19  ;;  %v1327_v25 = vpop.xlane.xlu0 %1326 }
 0x3be   : > { %2176 = vrcp.f32 %v1327_v25 }
 0x3bf   : > { %v1356_v52 = vsub.f32 2.0, %v1348_v53 }
 0x3c1   : > { %v1364_v40 = vmul.f32 %v2175_v17, %v1356_v52 }
 0x3c3   : > { %v1372_v28 = vmul.f32 %v2912_v7, %v1364_v40 }
 0x3c4   : > { %v2177_v31 = vpop.eup %2176 }
 0x3c5   : > { %v1349_v4 = vmul.f32 %v2177_v31, %v1327_v25  ;;  %v1329_v33 = vpop.xlane.xlu0 %1328  ;;  %1396 = vmatmul.f32.vlgmr.msrb.gmra.mxu3 %v1372_v28 }
 0x3c6   : > { %2178 = vrcp.f32 %v1329_v33 }
 0x3c7   : > { %v1357_v58 = vsub.f32 2.0, %v1349_v4 }
 0x3c9   : > { %v1365_v59 = vmul.f32 %v2177_v31, %v1357_v58 }
 0x3cb   : > { %v1373_v34 = vmul.f32 %v2915_v15, %v1365_v59 }
 0x3cc   : > { %v2179_v35 = vpop.eup %2178 }
 0x3cd   : > { %v1350_v37 = vmul.f32 %v2179_v35, %v1329_v33  ;;  %1399 = vmatmul.f32.gmra.mxu3 %v1373_v34  ;;  %v1331_v38 = vpop.xlane.xlu0 %1330 }
 0x3ce   : > { %2180 = vrcp.f32 %v1331_v38 }
 0x3cf   : > { %v1358_v7 = vsub.f32 2.0, %v1350_v37 }
 0x3d1   : > { %v1115_v41 = vpop.f32.mrf.mxu3  ;;  %v1366_v60 = vmul.f32 %v2179_v35, %v1358_v7 }
 0x3d2   : > { %1144 = vrot.lane.b32.xlu2 %v1115_v41, %s2262_s12 }
 0x3d3   : > { %v1374_v62 = vmul.f32 %v2920_v29, %v1366_v60 }
 0x3d4   : > { %v2181_v18 = vpop.eup %2180 }
 0x3d5   : > { %v1351_v42 = vmul.f32 %v2181_v18, %v1331_v38  ;;  %1402 = vmatmul.f32.gmra.mxu3 %v1374_v62  ;;  %v1333_v20 = vpop.xlane.xlu1 %1332 }
 0x3d6   : > { %v1616_v43 = vpop.xlane.xlu2 %1615  ;;  %2182 = vrcp.f32 %v1333_v20 }
 0x3d7   : > { %v1359_v0 = vsub.f32 2.0, %v1351_v42  ;;  %2184 = vrcp.f32 %v1616_v43 }
 0x3d9   : > { %v1118_v15 = vpop.f32.mrf.mxu3  ;;  %v1367_v22 = vmul.f32 %v2181_v18, %v1359_v0 }
 0x3da   : > { %1146 = vrot.lane.b32.xlu1 %v1118_v15, %s2262_s12 }
 0x3db   : > { %v1375_v11 = vmul.f32 %v2926_v39, %v1367_v22 }
 0x3dc   : > { %v2183_v47 = vpop.eup %2182 }
 0x3dd   : > { %v2185_v56 = vpop.eup %2184  ;;  %v1352_v6 = vmul.f32 %v2183_v47, %v1333_v20  ;;  %1405 = vmatmul.f32.gmra.mxu3 %v1375_v11  ;;  %v1335_v1 = vpop.xlane.xlu0 %1334 }
 0x3de   : > { %v1639_v29 = vmul.f32 %v2185_v56, %v1616_v43  ;;  %2186 = vrcp.f32 %v1335_v1  ;;  %v1618_v61 = vpop.xlane.xlu1 %1617 }
 0x3df   : > { %v1360_v2 = vsub.f32 2.0, %v1352_v6  ;;  %2188 = vrcp.f32 %v1618_v61 }
 0x3e0   : > { %v1647_v54 = vsub.f32 2.0, %v1639_v29 }
 0x3e1   : > { %v1121_v3 = vpop.f32.mrf.mxu3  ;;  %v1368_v5 = vmul.f32 %v2183_v47, %v1360_v2 }
 0x3e2   : > { %v1655_v50 = vmul.f32 %v2185_v56, %v1647_v54  ;;  %1148 = vrot.lane.b32.xlu0 %v1121_v3, %s2262_s12 }
 0x3e3   : > { %v1376_v48 = vmul.f32 %v2932_v49, %v1368_v5 }
 0x3e4   : > { %v2187_v14 = vpop.eup %2186  ;;  %v1663_v39 = vmul.f32 %v2934_v63, %v1655_v50 }
 0x3e5   : > { %v2189_v46 = vpop.eup %2188  ;;  %v1353_v9 = vmul.f32 %v2187_v14, %v1335_v1  ;;  %v1337_v12 = vpop.xlane.xlu2 %1336  ;;  %1408 = vmatmul.f32.gmra.mxu3 %v1376_v48 }
 0x3e6   : > { %v1640_v13 = vmul.f32 %v2189_v46, %v1618_v61  ;;  %v1620_v51 = vpop.xlane.xlu0 %1619  ;;  %1687 = vmatmul.f32.vlgmr.msrb.gmra.mxu2 %v1663_v39  ;;  %2190 = vrcp.f32 %v1337_v12 }
 0x3e7   : > { %v1361_v19 = vsub.f32 2.0, %v1353_v9  ;;  %2192 = vrcp.f32 %v1620_v51 }
 0x3e8   : > { %v1648_v16 = vsub.f32 2.0, %v1640_v13 }
 0x3e9   : > { %v1124_v55 = vpop.f32.mrf.mxu3  ;;  %v1369_v17 = vmul.f32 %v2187_v14, %v1361_v19 }
 0x3ea   : > { %1150 = vrot.lane.b32.xlu2 %v1124_v55, %s2262_s12  ;;  %v1656_v53 = vmul.f32 %v2189_v46, %v1648_v16 }
 0x3eb   : > { %v1377_v49 = vmul.f32 %v2941_v8, %v1369_v17 }
 0x3ec   : > { %v2191_v25 = vpop.eup %2190  ;;  %v1664_v63 = vmul.f32 %v2943_v21, %v1656_v53 }
 0x3ed   : > { %v2193_v52 = vpop.eup %2192  ;;  %v1354_v26 = vmul.f32 %v2191_v25, %v1337_v12  ;;  %1411 = vmatmul.f32.gmra.mxu3 %v1377_v49  ;;  %v1339_v40 = vpop.xlane.xlu1 %1338 }
 0x3ee   : > { %v1641_v57 = vmul.f32 %v2193_v52, %v1620_v51  ;;  %v1622_v28 = vpop.xlane.xlu2 %1621  ;;  %1690 = vmatmul.f32.gmra.mxu2 %v1664_v63  ;;  %2194 = vrcp.f32 %v1339_v40 }
 0x3ef   : > { %v1362_v31 = vsub.f32 2.0, %v1354_v26  ;;  %2196 = vrcp.f32 %v1622_v28 }
 0x3f0   : > { %v1649_v32 = vsub.f32 2.0, %v1641_v57 }
 0x3f1   : > { %v1127_v4 = vpop.f32.mrf.mxu3  ;;  %v1370_v33 = vmul.f32 %v2191_v25, %v1362_v31 }
 0x3f2   : > { %1152 = vrot.lane.b32.xlu1 %v1127_v4, %s2262_s12  ;;  %v1657_v58 = vmul.f32 %v2193_v52, %v1649_v32 }
 0x3f3   : > { %v1378_v8 = vmul.f32 %v2950_v23, %v1370_v33 }
 0x3f4   : > { %v2195_v59 = vpop.eup %2194  ;;  %v1665_v21 = vmul.f32 %v2952_v24, %v1657_v58 }
 0x3f5   : > { %v2197_v34 = vpop.eup %2196  ;;  %v1355_v35 = vmul.f32 %v2195_v59, %v1339_v40  ;;  %v1624_v37 = vpop.xlane.xlu0 %1623  ;;  %1414 = vmatmul.f32.gmra.mxu3 %v1378_v8 }
 0x3f6   : > { %v1642_v38 = vmul.f32 %v2197_v34, %v1622_v28  ;;  %2198 = vrcp.f32 %v1624_v37  ;;  %1693 = vmatmul.f32.gmra.mxu2 %v1665_v21  ;;  %v1628_v7 = vpop.xlane.xlu1 %1627 }
 0x3f7   : > { %v1363_v41 = vsub.f32 2.0, %v1355_v35  ;;  %2200 = vrcp.f32 %v1628_v7 }
 0x3f8   : > { %v1650_v60 = vsub.f32 2.0, %v1642_v38 }
 0x3f9   : > { %v1371_v62 = vmul.f32 %v2195_v59, %v1363_v41 }
 0x3fa   : > { %v1658_v18 = vmul.f32 %v2197_v34, %v1650_v60 }
 0x3fb   : > { %v1379_v42 = vmul.f32 %v2958_v27, %v1371_v62 }
 0x3fc   : > { %v2199_v20 = vpop.eup %2198  ;;  %v1666_v23 = vmul.f32 %v2960_v30, %v1658_v18 }
 0x3fd   : > { %v2201_v43 = vpop.eup %2200  ;;  %v1643_v24 = vmul.f32 %v2199_v20, %v1624_v37  ;;  %v1626_v0 = vpop.xlane.xlu2 %1625  ;;  %1417 = vmatmul.f32.gmra.mxu3 %v1379_v42 }
 0x3fe   : > { %v1645_v15 = vmul.f32 %v2201_v43, %v1628_v7  ;;  %v1630_v22 = vpop.xlane.xlu0 %1629  ;;  %2202 = vrcp.f32 %v1626_v0  ;;  %1696 = vmatmul.f32.gmra.mxu2 %v1666_v23 }
 0x3ff   : > { %v1651_v11 = vsub.f32 2.0, %v1643_v24  ;;  %2204 = vrcp.f32 %v1630_v22 }
 0x400   : > { %v1653_v47 = vsub.f32 2.0, %v1645_v15 }
 0x401   : > { %v1659_v56 = vmul.f32 %v2199_v20, %v1651_v11 }
 0x402   : > { %v1661_v6 = vmul.f32 %v2201_v43, %v1653_v47 }
 0x403   : > { %v1667_v27 = vmul.f32 %v2968_v10, %v1659_v56 }
 0x404   : > { %v2203_v1 = vpop.eup %2202  ;;  %v1669_v30 = vmul.f32 %v2970_v36, %v1661_v6 }
 0x405   : > { %v2205_v29 = vpop.eup %2204  ;;  %v1644_v61 = vmul.f32 %v2203_v1, %v1626_v0  ;;  %v1141_v2 = vpop.permute.xlu2 %1140 }
 0x406   : > { %v1646_v54 = vmul.f32 %v2205_v29, %v1630_v22  ;;  %1164 = vst.msk [vmem:[%s2818_s11 + $0x8] sm:$0xff] %vm1162_vm1, %v1141_v2  ;;  %1699 = vmatmul.f32.gmra.mxu2 %v1667_v27  ;;  %1705 = vmatmul.f32.vlgmr.msra.gmra.mxu3 %v1669_v30 }
 0x407   : > { %v1652_v3 = vsub.f32 2.0, %v1644_v61 }
 0x408   : > { %v1654_v5 = vsub.f32 2.0, %v1646_v54 }
 0x409   : > { %v1660_v50 = vmul.f32 %v2203_v1, %v1652_v3 }
 0x40a   : > { %v1662_v10 = vmul.f32 %v2205_v29, %v1654_v5 }
 0x40b   : > { %v1668_v48 = vmul.f32 %v2983_v44, %v1660_v50 }
 0x40c   : > { %v1670_v36 = vmul.f32 %v2986_v45, %v1662_v10 }
 0x40e   : > { %1702 = vmatmul.f32.gmra.mxu2 %v1668_v48  ;;  %1708 = vmatmul.f32.gmra.mxu3 %v1670_v36  ;;  %v1139_v14 = vpop.permute.xlu1 %1138 }
 0x40f   : > { %1163 = vst.msk [vmem:[%s2818_s11] sm:$0xff] %vm1162_vm1, %v1139_v14 }
 0x411   : > { %v1143_v39 = vpop.permute.xlu0 %1142 }
 0x412   : > { %1165 = vst.msk [vmem:[%s2818_s11 + $0x10] sm:$0xff] %vm1162_vm1, %v1143_v39 }
 0x42c   : > { %v1145_v46 = vpop.permute.xlu2 %1144 }
 0x42d   : > { %1166 = vst.msk [vmem:[%s2818_s11 + $0x18] sm:$0xff] %vm1162_vm1, %v1145_v46 }
 0x444   : > { %v1151_v9 = vpop.permute.xlu2 %1150 }
 0x445   : > { %1169 = vst.msk [vmem:[%s2818_s11 + $0x30] sm:$0xff] %vm1162_vm1, %v1151_v9 }
 0x448   : > { %v1397_v12 = vpop.f32.mrf.mxu3 }
 0x44c   : > { %v1147_v44 = vpop.permute.xlu1 %1146 }
 0x44d   : > { %1167 = vst.msk [vmem:[%s2818_s11 + $0x20] sm:$0xff] %vm1162_vm1, %v1147_v44 }
 0x450   : > { %v1400_v45 = vpop.f32.mrf.mxu3 }
 0x454   : > { %v1149_v13 = vpop.permute.xlu0 %1148 }
 0x455   : > { %1168 = vst.msk [vmem:[%s2818_s11 + $0x28] sm:$0xff] %vm1162_vm1, %v1149_v13 }
 0x458   : > { %v1403_v51 = vpop.f32.mrf.mxu3 }
 0x460   : > { %v1406_v16 = vpop.f32.mrf.mxu3 }
 0x464   : > { %v1153_v19 = vpop.permute.xlu1 %1152 }
 0x465   : > { %1170 = vst.msk [vmem:[%s2818_s11 + $0x38] sm:$0xff] %vm1162_vm1, %v1153_v19 }
 0x468   : > { %v1409_v17 = vpop.f32.mrf.mxu3 }
 0x469   : > { %v1688_v55 = vpop.f32.mrf.mxu2 }
 0x46a   : > { %1720 = vrot.lane.b32.xlu1 %v1688_v55, %s2263_s13 }
 0x470   : > { %v1412_v25 = vpop.f32.mrf.mxu3 }
 0x471   : > { %v1691_v53 = vpop.f32.mrf.mxu2 }
 0x472   : > { %1722 = vrot.lane.b32.xlu0 %v1691_v53, %s2263_s13 }
 0x478   : > { %v1415_v52 = vpop.f32.mrf.mxu3 }
 0x479   : > { %v1694_v49 = vpop.f32.mrf.mxu2 }
 0x47a   : > { %1724 = vrot.lane.b32.xlu2 %v1694_v49, %s2263_s13 }
 0x480   : > { %v1418_v40 = vpop.f32.mrf.mxu3 }
 0x481   : > { %v1697_v63 = vpop.f32.mrf.mxu2 }
 0x482   : > { %1431 = vrot.lane.b32.xlu2 %v1400_v45, %s2264_s14  ;;  %1726 = vrot.lane.b32.xlu1 %v1697_v63, %s2263_s13 }
 0x489   : > { %v1700_v26 = vpop.f32.mrf.mxu2  ;;  %v1706_v57 = vpop.f32.mrf.mxu3 }
 0x48a   : > { %1437 = vrot.lane.b32.xlu2 %v1409_v17, %s2264_s14  ;;  %1433 = vrot.lane.b32.xlu1 %v1403_v51, %s2264_s14 }
 0x48b   : > { %1728 = vrot.lane.b32.xlu0 %v1700_v26, %s2263_s13 }
 0x491   : > { %v1703_v28 = vpop.f32.mrf.mxu2  ;;  %v1709_v31 = vpop.f32.mrf.mxu3 }
 0x492   : > { %1439 = vrot.lane.b32.xlu1 %v1412_v25, %s2264_s14  ;;  %1443 = vrot.lane.b32.xlu2 %v1418_v40, %s2264_s14 }
 0x493   : > { %1429 = vrot.lane.b32.xlu0 %v1397_v12, %s2264_s14 }
 0x49a   : > { %1730 = vrot.lane.b32.xlu2 %v1703_v28, %s2263_s13  ;;  %1732 = vrot.lane.b32.xlu1 %v1706_v57, %s2263_s13 }
 0x49b   : > { %1435 = vrot.lane.b32.xlu0 %v1406_v16, %s2264_s14 }
 0x4a3   : > { %1441 = vrot.lane.b32.xlu0 %v1415_v52, %s2264_s14 }
 0x4ab   : > { %1734 = vrot.lane.b32.xlu0 %v1709_v31, %s2263_s13 }
 0x4d4   : > { %v1725_v32 = vpop.permute.xlu2 %1724 }
 0x4dc   : > { %v1432_v4 = vpop.permute.xlu2 %1431  ;;  %v1721_v8 = vpop.permute.xlu1 %1720 }
 0x4dd   : > { %1455 = vst.msk [vmem:[%s2818_s11 + $0x8] sm:$0xff] %vm1453_vm2, %v1432_v4 }
 0x4e4   : > { %v1723_v33 = vpop.permute.xlu0 %1722  ;;  %v1438_v58 = vpop.permute.xlu2 %1437 }
 0x4e5   : > { %1746 = vst.msk [vmem:[%s2818_s11 + $0x8] sm:$0xff] %vm1744_vm3, %v1723_v33 }
 0x4e6   : > { %1458 = vst.msk [vmem:[%s2818_s11 + $0x20] sm:$0xff] %vm1453_vm2, %v1438_v58 }
 0x4ec   : > { %v1444_v59 = vpop.permute.xlu2 %1443 }
 0x4ed   : > { %1461 = vst.msk [vmem:[%s2818_s11 + $0x38] sm:$0xff] %vm1453_vm2, %v1444_v59 }
 0x4f4   : > { %v1727_v21 = vpop.permute.xlu1 %1726  ;;  %v1731_v7 = vpop.permute.xlu2 %1730 }
 0x4fc   : > { %v1434_v34 = vpop.permute.xlu1 %1433 }
 0x4fd   : > { %v1729_v35 = vpop.permute.xlu0 %1728  ;;  %1456 = vst.msk [vmem:[%s2818_s11 + $0x10] sm:$0xff] %vm1453_vm2, %v1434_v34 }
 0x4fe   : > { %1749 = vst.msk [vmem:[%s2818_s11 + $0x20] sm:$0xff] %vm1744_vm3, %v1729_v35 }
 0x4ff   : > { %1747 = vst.msk [vmem:[%s2818_s11 + $0x10] sm:$0xff] %vm1744_vm3, %v1725_v32 }
 0x504   : > { %v1440_v37 = vpop.permute.xlu1 %1439 }
 0x505   : > { %v1430_v38 = vpop.permute.xlu0 %1429  ;;  %1459 = vst.msk [vmem:[%s2818_s11 + $0x28] sm:$0xff] %vm1453_vm2, %v1440_v37 }
 0x506   : > { %1454 = vst.msk [vmem:[%s2818_s11] sm:$0xff] %vm1453_vm2, %v1430_v38 }
 0x507   : > { %1745 = vst.msk [vmem:[%s2818_s11] sm:$0xff] %vm1744_vm3, %v1721_v8 }
 0x508   : > { %1750 = vst.msk [vmem:[%s2818_s11 + $0x28] sm:$0xff] %vm1744_vm3, %v1731_v7 }
 0x50c   : > { %v1733_v62 = vpop.permute.xlu1 %1732 }
 0x50d   : > { %v1436_v41 = vpop.permute.xlu0 %1435 }
 0x50e   : > { %1457 = vst.msk [vmem:[%s2818_s11 + $0x18] sm:$0xff] %vm1453_vm2, %v1436_v41 }
 0x50f   : > { %1748 = vst.msk [vmem:[%s2818_s11 + $0x18] sm:$0xff] %vm1744_vm3, %v1727_v21 }
 0x515   : > { %v1442_v60 = vpop.permute.xlu0 %1441 }
 0x516   : > { %1460 = vst.msk [vmem:[%s2818_s11 + $0x30] sm:$0xff] %vm1453_vm2, %v1442_v60 }
 0x517   : > { %1751 = vst.msk [vmem:[%s2818_s11 + $0x30] sm:$0xff] %vm1744_vm3, %v1733_v62 }
 0x51d   : > { %v1735_v18 = vpop.permute.xlu0 %1734 }
 0x51e   : > { %1752 = vst.msk [vmem:[%s2818_s11 + $0x38] sm:$0xff] %vm1744_vm3, %v1735_v18 }
 0x51f PF: > { %s15_s23 = sadd.s32 1, %s2260_s23   ;;  %s3108_s17 = smov %s2240_s18 }
 0x520   : > { %p12_p12 = scmp.ge.s32.totalorder %s15_s23, 6   ;;  %s3109_s18 = smov %s2344_s29 }
 0x521   : > { %s3110_s19 = smov %s2252_s21  ;;  %s3111_s20 = smov %s2256_s22 }
 0x522   : > { %s3112_s21 = smov %s3115_s0  ;;  %s3113_s22 = smov %s3119_s24 }
 0x523   :  { %14 = sbr.rel (!%p12_p12) target bundleno = 6 (0x6), region = 115 }

</bundles_post_ra>
